<compile_context>
chip_gen: v6e
topology: v6e:2x2x1
jax: 0.10.0
libtpu: 0.0.40
codegen_flags: <defaults>
</compile_context>

<pallas_src>
import functools

import jax
import jax.numpy as jnp
import numpy as np
from jax.experimental import pallas as pl
from jax.experimental.pallas import tpu as pltpu

EPS = 1e-5
K = 11            # kernel_size of c2
PAD = 5           # padding of c2
HALO = 16         # halo rows per tile: >= PAD, multiple of 16 (bf16 packing)
LANE = 128


def _round_up(x, m):
    return (x + m - 1) // m * m


# --------------------------- Pallas kernel ---------------------------------
def _residual_block_kernel(xh_ref,
                           w1_ref, b1_ref,
                           w2_ref, b2_ref,
                           w3_ref, b3_ref,
                           wd_ref, bd_ref,
                           o_ref,
                           *, seq_len, tile_l, compute_dtype):
    """One (batch, L-tile) per grid step.  xh_ref: (1, 1, TILE_L+2*HALO, Cp)."""
    lt = pl.program_id(1)
    xh = xh_ref[0, 0]                                     # (thl, Cp) compute_dtype
    thl = xh.shape[0]

    # ---- c1 (1x1 conv; BN1 scale folded into w1) + bias + relu, halo rows ----
    h1 = jnp.dot(xh, w1_ref[...], preferred_element_type=jnp.float32)
    h1c = jnp.maximum(h1 + b1_ref[...], 0.0).astype(compute_dtype)

    # c2 zero-pads its *input* (h1); rows outside the real sequence would be
    # relu(bn1 bias) != 0, so zero them.  Cheap bf16 select; interior tiles
    # make it a no-op (not worth a pl.when + VMEM round-trip).
    r = jax.lax.broadcasted_iota(jnp.int32, (thl, 1), 0)
    pos = lt * tile_l - HALO + r
    h1c = jnp.where((pos >= 0) & (pos < seq_len), h1c, jnp.zeros_like(h1c))

    # ---- c2 (k=11, pad=5, 'same') + bn2 bias + relu: one im2col matmul ----
    # (v5e note: if vst saturates there, K accumulating matmuls avoid the slab.)
    base = HALO - PAD
    im = jnp.concatenate(
        [h1c[base + t: base + t + tile_l, :] for t in range(K)], axis=1)
    h2 = jnp.dot(im, w2_ref[...], preferred_element_type=jnp.float32)
    h2 = jnp.maximum(h2 + b2_ref[...], 0.0)                         # (TL, C2p)

    # ---- c3 (1x1 conv) + bn3 bias ----
    h3 = jnp.dot(h2.astype(compute_dtype), w3_ref[...],
                 preferred_element_type=jnp.float32) + b3_ref[...]  # (TL, C8p)

    # ---- downsample branch (1x1 conv + bn bias) on aligned core rows of x ----
    x_core = xh[HALO:HALO + tile_l, :]
    idn = jnp.dot(x_core, wd_ref[...],
                  preferred_element_type=jnp.float32) + bd_ref[...]

    # ---- residual add + relu in f32, downcast on store ----
    o_ref[0] = jnp.maximum(h3 + idn, 0.0).astype(o_ref.dtype)


# --------------------------- wrapper helpers --------------------------------
def _bn_scale_bias(bn):
    gamma, beta, mean, var = bn
    s = gamma / jnp.sqrt(var + EPS)
    return s, beta - mean * s


def _pad_bias(b, c_pad):
    return jnp.pad(b, (0, c_pad - b.shape[0])).reshape(1, -1).astype(jnp.float32)


def _pad2(a, rows, cols):
    return jnp.pad(a, ((0, rows - a.shape[0]), (0, cols - a.shape[1])))


def _vmem_capacity_bytes():
    try:
        return int(pltpu.get_tpu_info().vmem_capacity_bytes)
    except Exception:
        return 64 << 20          # conservative: v7x per-TensorCore VMEM


def _vmem_bytes(tile_l, Cp, C2p, C8p, csize, osize, weight_bufs):
    thl = tile_l + 2 * HALO
    weights = weight_bufs * csize * (Cp * Cp + K * Cp * C2p + C2p * C8p + Cp * C8p)
    biases = 2 * 4 * (Cp + C2p + 2 * C8p)
    io = 2 * thl * Cp * csize + 2 * tile_l * C8p * osize      # double-buffered x / out
    tmps = (thl * Cp * (4 + csize)                            # h1 f32 + h1c
            + tile_l * K * Cp * csize                         # im2col slab
            + tile_l * C2p * (4 + csize)                      # h2 f32 + bf16
            + 2 * tile_l * C8p * 4)                           # h3 + idn f32
    return weights + biases + io + tmps


# --------------------------- entry points ------------------------------------
def residual_block_1d_nlc(x_nlc, params, *, tile_l=None,
                          compute_dtype=jnp.bfloat16, out_dtype=None):
    """Channels-last entry point: (N, L, C) -> (N, L, 8C)."""
    N, L, C = x_nlc.shape
    C2, C8 = 2 * C, 8 * C
    Cp, C2p, C8p = (_round_up(c, LANE) for c in (C, C2, C8))

    cdt = compute_dtype
    odt = cdt if out_dtype is None else out_dtype
    csize = jnp.dtype(cdt).itemsize
    osize = jnp.dtype(odt).itemsize

    # ---- generation-aware VMEM budget & L-tile selection ----
    vmem_cap = _vmem_capacity_bytes()
    budget = int(0.70 * vmem_cap)
    if tile_l is None:
        tile_l = _round_up(min(L, 256 if C >= 256 else 512), 8)
        while (tile_l > 64 and
               _vmem_bytes(tile_l, Cp, C2p, C8p, csize, osize, 1) > budget):
            tile_l = max(64, _round_up(tile_l // 2, 8))
    assert tile_l % 8 == 0, "tile_l must be a multiple of 8"
    nt = pl.cdiv(L, tile_l)
    l_pad = nt * tile_l
    thl = tile_l + 2 * HALO

    # ---- glue (plain JAX): cast to bf16 FIRST, lane/halo pad, overlapping
    #      windows built from static slices (contiguous copies, no gather) ----
    # NOTE: channel padding to Cp inflates input DMA by Cp/C for small C; kept
    #       for lane-dense matmuls (input side is small vs. the 8C output).
    x = jnp.pad(x_nlc.astype(cdt),
                ((0, 0), (HALO, HALO + (l_pad - L)), (0, Cp - C)))
    x_halo = jnp.stack(
        [x[:, i * tile_l: i * tile_l + thl, :] for i in range(nt)],
        axis=1)                                               # (N, nt, thl, Cp)

    # ---- fold eval-mode BN scale into weights; kernel only adds bias ----
    s1, b1 = _bn_scale_bias(params["bn1"])
    s2, b2 = _bn_scale_bias(params["bn2"])
    s3, b3 = _bn_scale_bias(params["bn3"])
    sd, bd = _bn_scale_bias(params["bnd"])

    w1 = _pad2(jnp.transpose(params["w1"][:, :, 0], (1, 0)) * s1[None, :],
               Cp, Cp).astype(cdt)
    wd = _pad2(jnp.transpose(params["wd"][:, :, 0], (1, 0)) * sd[None, :],
               Cp, C8p).astype(cdt)
    w3 = _pad2(jnp.transpose(params["w3"][:, :, 0], (1, 0)) * s3[None, :],
               C2p, C8p).astype(cdt)
    w2 = jnp.transpose(params["w2"], (2, 1, 0)) * s2[None, None, :]    # (K, C, 2C)
    w2 = jnp.pad(w2, ((0, 0), (0, Cp - C), (0, C2p - C2)))
    w2 = w2.reshape(K * Cp, C2p).astype(cdt)                           # im2col weights

    b1p, b2p = _pad_bias(b1, Cp), _pad_bias(b2, C2p)
    b3p, bdp = _pad_bias(b3, C8p), _pad_bias(bd, C8p)

    kernel = functools.partial(_residual_block_kernel, seq_len=L,
                               tile_l=tile_l, compute_dtype=cdt)

    weight_bytes = csize * (Cp * Cp + K * Cp * C2p + C2p * C8p + Cp * C8p)
    est_db = _vmem_bytes(tile_l, Cp, C2p, C8p, csize, osize, 2)  # headroom if
    vmem_limit = int(min(int(0.92 * vmem_cap),                   # weights end up
                         max(32 << 20, 2 * est_db)))             # double-buffered

    flops = 2 * N * l_pad * (Cp * Cp + K * Cp * C2p + C2p * C8p + Cp * C8p)
    bytes_accessed = int(N * nt * thl * Cp * csize
                         + N * l_pad * C8p * osize + weight_bytes)

    def make_call(weight_mode):
        def const_spec(shape):
            idx = lambda n, t: (0,) * len(shape)
            if weight_mode is None:
                return pl.BlockSpec(shape, idx)
            return pl.BlockSpec(shape, idx, pipeline_mode=weight_mode)

        return pl.pallas_call(
            kernel,
            out_shape=jax.ShapeDtypeStruct((N, l_pad, C8p), odt),
            grid_spec=pltpu.PrefetchScalarGridSpec(
                num_scalar_prefetch=0,
                grid=(N, nt),
                in_specs=[
                    pl.BlockSpec((1, 1, thl, Cp), lambda n, t: (n, t, 0, 0)),
                    const_spec((Cp, Cp)), const_spec((1, Cp)),          # c1 / bn1
                    const_spec((K * Cp, C2p)), const_spec((1, C2p)),    # c2 / bn2
                    const_spec((C2p, C8p)), const_spec((1, C8p)),       # c3 / bn3
                    const_spec((Cp, C8p)), const_spec((1, C8p)),        # downsample
                ],
                out_specs=pl.BlockSpec((1, tile_l, C8p), lambda n, t: (n, t, 0)),
            ),
            compiler_params=pltpu.CompilerParams(
                dimension_semantics=("parallel", "parallel"),
                vmem_limit_bytes=vmem_limit),
            cost_estimate=pl.CostEstimate(flops=flops, transcendentals=0,
                                          bytes_accessed=bytes_accessed),
        )

    args = (x_halo, w1, b1p, w2, b2p, w3, b3p, wd, bdp)
    try:
        # single-buffer the grid-invariant weight / bias blocks (halves their
        # VMEM footprint; matters most on v7x's 64 MiB VMEM at large planes).
        out = make_call(pl.Buffered(1))(*args)
    except Exception:
        out = make_call(None)(*args)      # fallback: default double-buffering

    if l_pad == L and C8p == C8:
        return out                        # no extra HBM crop pass needed
    return out[:, :L, :C8]                # strip L / lane padding


def residual_block_1d(x_ncl, params, *, tile_l=None,
                      compute_dtype=jnp.bfloat16, out_dtype=None):
    """PyTorch-layout wrapper: x (N, C, L) -> (N, 8C, L).

    Prefer residual_block_1d_nlc (channels-last) from a channels-last model to
    avoid these two full-tensor HBM transposes.
    """
    out_nlc = residual_block_1d_nlc(jnp.transpose(x_ncl, (0, 2, 1)), params,
                                    tile_l=tile_l, compute_dtype=compute_dtype,
                                    out_dtype=out_dtype)
    return jnp.transpose(out_nlc, (0, 2, 1))


# ---------------- pure-JAX reference (verification only) --------------------
def _ref_forward(x_ncl, params):
    def conv1d(x, w, pad):
        return jax.lax.conv_general_dilated(
            x, w, (1,), [(pad, pad)], dimension_numbers=("NCH", "OIH", "NCH"))

    def bn(x, bn_p):
        gamma, beta, mean, var = bn_p
        s = gamma / jnp.sqrt(var + EPS)
        return (x - mean[None, :, None]) * s[None, :, None] + beta[None, :, None]

    h = jax.nn.relu(bn(conv1d(x_ncl, params["w1"], 0), params["bn1"]))
    h = jax.nn.relu(bn(conv1d(h, params["w2"], PAD), params["bn2"]))
    h = bn(conv1d(h, params["w3"], 0), params["bn3"])
    idn = bn(conv1d(x_ncl, params["wd"], 0), params["bnd"])
    return jax.nn.relu(h + idn)


def _init_params(key, planes):
    """Deterministic synthetic parameters in PyTorch layouts."""
    C, C2, C8 = planes, 2 * planes, 8 * planes
    ks = jax.random.split(key, 12)

    def conv_w(k, out_c, in_c, ksz):
        scale = 1.0 / np.sqrt(in_c * ksz)
        return jax.random.normal(k, (out_c, in_c, ksz), jnp.float32) * scale

    def bn_p(k, c):
        k1, k2, k3, k4 = jax.random.split(k, 4)
        gamma = 1.0 + 0.1 * jax.random.normal(k1, (c,), jnp.float32)
        beta = 0.1 * jax.random.normal(k2, (c,), jnp.float32)
        mean = 0.1 * jax.random.normal(k3, (c,), jnp.float32)
        var = jnp.abs(1.0 + 0.1 * jax.random.normal(k4, (c,), jnp.float32))
        return (gamma, beta, mean, var)

    return {
        "w1": conv_w(ks[0], C, C, 1),   "bn1": bn_p(ks[1], C),
        "w2": conv_w(ks[2], C2, C, K),  "bn2": bn_p(ks[3], C2),
        "w3": conv_w(ks[4], C8, C2, 1), "bn3": bn_p(ks[5], C8),
        "wd": conv_w(ks[6], C8, C, 1),  "bnd": bn_p(ks[7], C8),
    }


if __name__ == "__main__":
    planes, N, L = 4, 2, 20
    key = jax.random.PRNGKey(0)
    kx, kp = jax.random.split(key)

    x = jax.random.normal(kx, (N, planes, L), jnp.float32)          # (N, C, L)
    params = _init_params(kp, planes)

    # tile_l=8 with L=20 -> three L tiles incl. a ragged tail, exercising the
    # halo, sequence-edge masking and crop paths.
    out = residual_block_1d(x, params, tile_l=8)
    out = jax.block_until_ready(out)

    ref = jax.block_until_ready(_ref_forward(x, params))
    # bf16 activations/weights/output with f32 accumulation -> loose tolerance.
    np.testing.assert_allclose(np.asarray(out.astype(jnp.float32)),
                               np.asarray(ref), atol=6e-2, rtol=6e-2)

    assert out.shape == (N, 8 * planes, L)
    print("KERNEL_OK")
</pallas_src>

<mosaic_0001>
module attributes {stable_mosaic.version = 11 : i64} {
  func.func @_residual_block_kernel(%arg0: i32, %arg1: i32, %arg2: memref<1x1x40x128xbf16, #tpu.memory_space<vmem>>, %arg3: memref<128x128xbf16, #tpu.memory_space<vmem>>, %arg4: memref<1x128xf32, #tpu.memory_space<vmem>>, %arg5: memref<1408x128xbf16, #tpu.memory_space<vmem>>, %arg6: memref<1x128xf32, #tpu.memory_space<vmem>>, %arg7: memref<128x128xbf16, #tpu.memory_space<vmem>>, %arg8: memref<1x128xf32, #tpu.memory_space<vmem>>, %arg9: memref<128x128xbf16, #tpu.memory_space<vmem>>, %arg10: memref<1x128xf32, #tpu.memory_space<vmem>>, %arg11: memref<1x8x128xbf16, #tpu.memory_space<vmem>>) attributes {dimension_semantics = [#tpu.dimension_semantics<parallel>, #tpu.dimension_semantics<parallel>], iteration_bounds = array<i64: 2, 3>, scalar_prefetch = 0 : i64, scratch_operands = 0 : i64, tpu.core_type = #tpu.core_type<tc>, window_params = [{transform_indices = @transform_0, window_bounds = array<i64: 1, 1, 40, 128>}, {pipeline_mode = #tpu.pipeline_mode<synchronous>, transform_indices = @transform_1, window_bounds = array<i64: 128, 128>}, {pipeline_mode = #tpu.pipeline_mode<synchronous>, transform_indices = @transform_2, window_bounds = array<i64: 1, 128>}, {pipeline_mode = #tpu.pipeline_mode<synchronous>, transform_indices = @transform_3, window_bounds = array<i64: 1408, 128>}, {pipeline_mode = #tpu.pipeline_mode<synchronous>, transform_indices = @transform_4, window_bounds = array<i64: 1, 128>}, {pipeline_mode = #tpu.pipeline_mode<synchronous>, transform_indices = @transform_5, window_bounds = array<i64: 128, 128>}, {pipeline_mode = #tpu.pipeline_mode<synchronous>, transform_indices = @transform_6, window_bounds = array<i64: 1, 128>}, {pipeline_mode = #tpu.pipeline_mode<synchronous>, transform_indices = @transform_7, window_bounds = array<i64: 128, 128>}, {pipeline_mode = #tpu.pipeline_mode<synchronous>, transform_indices = @transform_8, window_bounds = array<i64: 1, 128>}, {transform_indices = @transform_9, window_bounds = array<i64: 1, 8, 128>}]} {
    %c0 = arith.constant 0 : index
    %c0_0 = arith.constant 0 : index
    %c0_1 = arith.constant 0 : index
    %c0_2 = arith.constant 0 : index
    %0 = vector.load %arg2[%c0, %c0_0, %c0_1, %c0_2] : memref<1x1x40x128xbf16, #tpu.memory_space<vmem>>, vector<1x1x40x128xbf16>
    %1 = vector.shape_cast %0 : vector<1x1x40x128xbf16> to vector<40x128xbf16>
    %c0_3 = arith.constant 0 : index
    %c0_4 = arith.constant 0 : index
    %2 = vector.load %arg3[%c0_3, %c0_4] : memref<128x128xbf16, #tpu.memory_space<vmem>>, vector<128x128xbf16>
    %cst = arith.constant dense<0.000000e+00> : vector<40x128xf32>
    %3 = tpu.matmul %1, %2, %cst {dimension_numbers = #tpu.dot_dimension_numbers<[1], [0], [0], [1], [0, 0, 1, 1], [], []>} : vector<40x128xbf16>, vector<128x128xbf16>, vector<40x128xf32> -> vector<40x128xf32>
    %c0_5 = arith.constant 0 : index
    %c0_6 = arith.constant 0 : index
    %4 = vector.load %arg4[%c0_5, %c0_6] : memref<1x128xf32, #tpu.memory_space<vmem>>, vector<1x128xf32>
    %5 = vector.broadcast %4 : vector<1x128xf32> to vector<40x128xf32>
    %6 = arith.addf %3, %5 : vector<40x128xf32>
    %cst_7 = arith.constant 0.000000e+00 : f32
    %7 = vector.broadcast %cst_7 : f32 to vector<40x128xf32>
    %8 = arith.maximumf %6, %7 : vector<40x128xf32>
    %9 = arith.truncf %8 : vector<40x128xf32> to vector<40x128xbf16>
    %10 = tpu.iota {dimensions = array<i32: 0>} : vector<40x1xi32>
    %c8_i32 = arith.constant 8 : i32
    %11 = arith.muli %arg1, %c8_i32 : i32
    %c16_i32 = arith.constant 16 : i32
    %12 = arith.subi %11, %c16_i32 : i32
    %13 = vector.broadcast %12 : i32 to vector<40x1xi32>
    %14 = arith.addi %13, %10 : vector<40x1xi32>
    %c0_i32 = arith.constant 0 : i32
    %15 = vector.broadcast %c0_i32 : i32 to vector<40x1xi32>
    %16 = arith.cmpi sge, %14, %15 : vector<40x1xi32>
    %c20_i32 = arith.constant 20 : i32
    %17 = vector.broadcast %c20_i32 : i32 to vector<40x1xi32>
    %18 = arith.cmpi slt, %14, %17 : vector<40x1xi32>
    %19 = arith.andi %16, %18 : vector<40x1xi1>
    %cst_8 = arith.constant 0.000000e+00 : bf16
    %20 = vector.broadcast %cst_8 : bf16 to vector<40x128xbf16>
    %21 = vector.shape_cast %19 : vector<40x1xi1> to vector<40x1xi1>
    %22 = vector.broadcast %21 : vector<40x1xi1> to vector<40x128xi1>
    %23 = arith.select %22, %9, %20 : vector<40x128xi1>, vector<40x128xbf16>
    %24 = vector.extract_strided_slice %23 {offsets = [11, 0], sizes = [8, 128], strides = [1, 1]} : vector<40x128xbf16> to vector<8x128xbf16>
    %25 = vector.extract_strided_slice %23 {offsets = [12, 0], sizes = [8, 128], strides = [1, 1]} : vector<40x128xbf16> to vector<8x128xbf16>
    %26 = vector.extract_strided_slice %23 {offsets = [13, 0], sizes = [8, 128], strides = [1, 1]} : vector<40x128xbf16> to vector<8x128xbf16>
    %27 = vector.extract_strided_slice %23 {offsets = [14, 0], sizes = [8, 128], strides = [1, 1]} : vector<40x128xbf16> to vector<8x128xbf16>
    %28 = vector.extract_strided_slice %23 {offsets = [15, 0], sizes = [8, 128], strides = [1, 1]} : vector<40x128xbf16> to vector<8x128xbf16>
    %29 = vector.extract_strided_slice %23 {offsets = [16, 0], sizes = [8, 128], strides = [1, 1]} : vector<40x128xbf16> to vector<8x128xbf16>
    %30 = vector.extract_strided_slice %23 {offsets = [17, 0], sizes = [8, 128], strides = [1, 1]} : vector<40x128xbf16> to vector<8x128xbf16>
    %31 = vector.extract_strided_slice %23 {offsets = [18, 0], sizes = [8, 128], strides = [1, 1]} : vector<40x128xbf16> to vector<8x128xbf16>
    %32 = vector.extract_strided_slice %23 {offsets = [19, 0], sizes = [8, 128], strides = [1, 1]} : vector<40x128xbf16> to vector<8x128xbf16>
    %33 = vector.extract_strided_slice %23 {offsets = [20, 0], sizes = [8, 128], strides = [1, 1]} : vector<40x128xbf16> to vector<8x128xbf16>
    %34 = vector.extract_strided_slice %23 {offsets = [21, 0], sizes = [8, 128], strides = [1, 1]} : vector<40x128xbf16> to vector<8x128xbf16>
    %35 = tpu.concatenate %24, %25, %26, %27, %28, %29, %30, %31, %32, %33, %34 in 1 : vector<8x128xbf16>, vector<8x128xbf16>, vector<8x128xbf16>, vector<8x128xbf16>, vector<8x128xbf16>, vector<8x128xbf16>, vector<8x128xbf16>, vector<8x128xbf16>, vector<8x128xbf16>, vector<8x128xbf16>, vector<8x128xbf16> -> vector<8x1408xbf16>
    %c0_9 = arith.constant 0 : index
    %c0_10 = arith.constant 0 : index
    %36 = vector.load %arg5[%c0_9, %c0_10] : memref<1408x128xbf16, #tpu.memory_space<vmem>>, vector<1408x128xbf16>
    %cst_11 = arith.constant dense<0.000000e+00> : vector<8x128xf32>
    %37 = tpu.matmul %35, %36, %cst_11 {dimension_numbers = #tpu.dot_dimension_numbers<[1], [0], [0], [1], [0, 0, 1, 1], [], []>} : vector<8x1408xbf16>, vector<1408x128xbf16>, vector<8x128xf32> -> vector<8x128xf32>
    %c0_12 = arith.constant 0 : index
    %c0_13 = arith.constant 0 : index
    %38 = vector.load %arg6[%c0_12, %c0_13] : memref<1x128xf32, #tpu.memory_space<vmem>>, vector<1x128xf32>
    %39 = vector.broadcast %38 : vector<1x128xf32> to vector<8x128xf32>
    %40 = arith.addf %37, %39 : vector<8x128xf32>
    %cst_14 = arith.constant 0.000000e+00 : f32
    %41 = vector.broadcast %cst_14 : f32 to vector<8x128xf32>
    %42 = arith.maximumf %40, %41 : vector<8x128xf32>
    %43 = arith.truncf %42 : vector<8x128xf32> to vector<8x128xbf16>
    %c0_15 = arith.constant 0 : index
    %c0_16 = arith.constant 0 : index
    %44 = vector.load %arg7[%c0_15, %c0_16] : memref<128x128xbf16, #tpu.memory_space<vmem>>, vector<128x128xbf16>
    %cst_17 = arith.constant dense<0.000000e+00> : vector<8x128xf32>
    %45 = tpu.matmul %43, %44, %cst_17 {dimension_numbers = #tpu.dot_dimension_numbers<[1], [0], [0], [1], [0, 0, 1, 1], [], []>} : vector<8x128xbf16>, vector<128x128xbf16>, vector<8x128xf32> -> vector<8x128xf32>
    %c0_18 = arith.constant 0 : index
    %c0_19 = arith.constant 0 : index
    %46 = vector.load %arg8[%c0_18, %c0_19] : memref<1x128xf32, #tpu.memory_space<vmem>>, vector<1x128xf32>
    %47 = vector.broadcast %46 : vector<1x128xf32> to vector<8x128xf32>
    %48 = arith.addf %45, %47 : vector<8x128xf32>
    %49 = vector.extract_strided_slice %1 {offsets = [16, 0], sizes = [8, 128], strides = [1, 1]} : vector<40x128xbf16> to vector<8x128xbf16>
    %c0_20 = arith.constant 0 : index
    %c0_21 = arith.constant 0 : index
    %50 = vector.load %arg9[%c0_20, %c0_21] : memref<128x128xbf16, #tpu.memory_space<vmem>>, vector<128x128xbf16>
    %cst_22 = arith.constant dense<0.000000e+00> : vector<8x128xf32>
    %51 = tpu.matmul %49, %50, %cst_22 {dimension_numbers = #tpu.dot_dimension_numbers<[1], [0], [0], [1], [0, 0, 1, 1], [], []>} : vector<8x128xbf16>, vector<128x128xbf16>, vector<8x128xf32> -> vector<8x128xf32>
    %c0_23 = arith.constant 0 : index
    %c0_24 = arith.constant 0 : index
    %52 = vector.load %arg10[%c0_23, %c0_24] : memref<1x128xf32, #tpu.memory_space<vmem>>, vector<1x128xf32>
    %53 = vector.broadcast %52 : vector<1x128xf32> to vector<8x128xf32>
    %54 = arith.addf %51, %53 : vector<8x128xf32>
    %55 = arith.addf %48, %54 : vector<8x128xf32>
    %cst_25 = arith.constant 0.000000e+00 : f32
    %56 = vector.broadcast %cst_25 : f32 to vector<8x128xf32>
    %57 = arith.maximumf %55, %56 : vector<8x128xf32>
    %58 = arith.truncf %57 : vector<8x128xf32> to vector<8x128xbf16>
    %c0_26 = arith.constant 0 : index
    %c0_27 = arith.constant 0 : index
    %c0_28 = arith.constant 0 : index
    %59 = vector.load %arg11[%c0_26, %c0_27, %c0_28] : memref<1x8x128xbf16, #tpu.memory_space<vmem>>, vector<1x8x128xbf16>
    %60 = vector.shape_cast %59 : vector<1x8x128xbf16> to vector<8x128xbf16>
    %61 = vector.shape_cast %58 : vector<8x128xbf16> to vector<1x8x128xbf16>
    tpu.vector_store %arg11[%c0_26, %c0_27, %c0_28], %61 {strides = array<i32>} : memref<1x8x128xbf16, #tpu.memory_space<vmem>>, vector<1x8x128xbf16>,
    return
  }
  func.func @transform_0(%arg0: i32, %arg1: i32) -> (i32, i32, i32, i32) {
    %c0_i32 = arith.constant 0 : i32
    %c0_i32_0 = arith.constant 0 : i32
    %c0_i32_1 = arith.constant 0 : i32
    return %arg0, %arg1, %c0_i32, %c0_i32_0 : i32, i32, i32, i32
  }
  func.func @transform_1(%arg0: i32, %arg1: i32) -> (i32, i32) {
    %c0_i32 = arith.constant 0 : i32
    %c0_i32_0 = arith.constant 0 : i32
    %c0_i32_1 = arith.constant 0 : i32
    return %c0_i32, %c0_i32_0 : i32, i32
  }
  func.func @transform_2(%arg0: i32, %arg1: i32) -> (i32, i32) {
    %c0_i32 = arith.constant 0 : i32
    %c0_i32_0 = arith.constant 0 : i32
    %c0_i32_1 = arith.constant 0 : i32
    return %c0_i32, %c0_i32_0 : i32, i32
  }
  func.func @transform_3(%arg0: i32, %arg1: i32) -> (i32, i32) {
    %c0_i32 = arith.constant 0 : i32
    %c0_i32_0 = arith.constant 0 : i32
    %c0_i32_1 = arith.constant 0 : i32
    return %c0_i32, %c0_i32_0 : i32, i32
  }
  func.func @transform_4(%arg0: i32, %arg1: i32) -> (i32, i32) {
    %c0_i32 = arith.constant 0 : i32
    %c0_i32_0 = arith.constant 0 : i32
    %c0_i32_1 = arith.constant 0 : i32
    return %c0_i32, %c0_i32_0 : i32, i32
  }
  func.func @transform_5(%arg0: i32, %arg1: i32) -> (i32, i32) {
    %c0_i32 = arith.constant 0 : i32
    %c0_i32_0 = arith.constant 0 : i32
    %c0_i32_1 = arith.constant 0 : i32
    return %c0_i32, %c0_i32_0 : i32, i32
  }
  func.func @transform_6(%arg0: i32, %arg1: i32) -> (i32, i32) {
    %c0_i32 = arith.constant 0 : i32
    %c0_i32_0 = arith.constant 0 : i32
    %c0_i32_1 = arith.constant 0 : i32
    return %c0_i32, %c0_i32_0 : i32, i32
  }
  func.func @transform_7(%arg0: i32, %arg1: i32) -> (i32, i32) {
    %c0_i32 = arith.constant 0 : i32
    %c0_i32_0 = arith.constant 0 : i32
    %c0_i32_1 = arith.constant 0 : i32
    return %c0_i32, %c0_i32_0 : i32, i32
  }
  func.func @transform_8(%arg0: i32, %arg1: i32) -> (i32, i32) {
    %c0_i32 = arith.constant 0 : i32
    %c0_i32_0 = arith.constant 0 : i32
    %c0_i32_1 = arith.constant 0 : i32
    return %c0_i32, %c0_i32_0 : i32, i32
  }
  func.func @transform_9(%arg0: i32, %arg1: i32) -> (i32, i32, i32) {
    %c0_i32 = arith.constant 0 : i32
    %c0_i32_0 = arith.constant 0 : i32
    return %arg0, %arg1, %c0_i32 : i32, i32, i32
  }
}

module attributes {stable_mosaic.version = 11 : i64} {
  func.func @_residual_block_kernel(%arg0: i32, %arg1: i32, %arg2: memref<1x1x40x128xbf16, #tpu.memory_space<vmem>>, %arg3: memref<128x128xbf16, #tpu.memory_space<vmem>>, %arg4: memref<1x128xf32, #tpu.memory_space<vmem>>, %arg5: memref<1408x128xbf16, #tpu.memory_space<vmem>>, %arg6: memref<1x128xf32, #tpu.memory_space<vmem>>, %arg7: memref<128x128xbf16, #tpu.memory_space<vmem>>, %arg8: memref<1x128xf32, #tpu.memory_space<vmem>>, %arg9: memref<128x128xbf16, #tpu.memory_space<vmem>>, %arg10: memref<1x128xf32, #tpu.memory_space<vmem>>, %arg11: memref<1x8x128xbf16, #tpu.memory_space<vmem>>) attributes {dimension_semantics = [#tpu.dimension_semantics<parallel>, #tpu.dimension_semantics<parallel>], iteration_bounds = array<i64: 2, 3>, scalar_prefetch = 0 : i64, scratch_operands = 0 : i64, tpu.core_type = #tpu.core_type<tc>, window_params = [{transform_indices = @transform_0, window_bounds = array<i64: 1, 1, 40, 128>}, {pipeline_mode = #tpu.pipeline_mode<synchronous>, transform_indices = @transform_1, window_bounds = array<i64: 128, 128>}, {pipeline_mode = #tpu.pipeline_mode<synchronous>, transform_indices = @transform_2, window_bounds = array<i64: 1, 128>}, {pipeline_mode = #tpu.pipeline_mode<synchronous>, transform_indices = @transform_3, window_bounds = array<i64: 1408, 128>}, {pipeline_mode = #tpu.pipeline_mode<synchronous>, transform_indices = @transform_4, window_bounds = array<i64: 1, 128>}, {pipeline_mode = #tpu.pipeline_mode<synchronous>, transform_indices = @transform_5, window_bounds = array<i64: 128, 128>}, {pipeline_mode = #tpu.pipeline_mode<synchronous>, transform_indices = @transform_6, window_bounds = array<i64: 1, 128>}, {pipeline_mode = #tpu.pipeline_mode<synchronous>, transform_indices = @transform_7, window_bounds = array<i64: 128, 128>}, {pipeline_mode = #tpu.pipeline_mode<synchronous>, transform_indices = @transform_8, window_bounds = array<i64: 1, 128>}, {transform_indices = @transform_9, window_bounds = array<i64: 1, 8, 128>}]} {
    %c0 = arith.constant 0 : index
    %c0_0 = arith.constant 0 : index
    %c0_1 = arith.constant 0 : index
    %c0_2 = arith.constant 0 : index
    %0 = vector.load %arg2[%c0, %c0_0, %c0_1, %c0_2] : memref<1x1x40x128xbf16, #tpu.memory_space<vmem>>, vector<1x1x40x128xbf16>
    %1 = vector.shape_cast %0 : vector<1x1x40x128xbf16> to vector<40x128xbf16>
    %c0_3 = arith.constant 0 : index
    %c0_4 = arith.constant 0 : index
    %2 = vector.load %arg3[%c0_3, %c0_4] : memref<128x128xbf16, #tpu.memory_space<vmem>>, vector<128x128xbf16>
    %cst = arith.constant dense<0.000000e+00> : vector<40x128xf32>
    %3 = tpu.matmul %1, %2, %cst {dimension_numbers = #tpu.dot_dimension_numbers<[1], [0], [0], [1], [0, 0, 1, 1], [], []>} : vector<40x128xbf16>, vector<128x128xbf16>, vector<40x128xf32> -> vector<40x128xf32>
    %c0_5 = arith.constant 0 : index
    %c0_6 = arith.constant 0 : index
    %4 = vector.load %arg4[%c0_5, %c0_6] : memref<1x128xf32, #tpu.memory_space<vmem>>, vector<1x128xf32>
    %5 = vector.broadcast %4 : vector<1x128xf32> to vector<40x128xf32>
    %6 = arith.addf %3, %5 : vector<40x128xf32>
    %cst_7 = arith.constant 0.000000e+00 : f32
    %7 = vector.broadcast %cst_7 : f32 to vector<40x128xf32>
    %8 = arith.maximumf %6, %7 : vector<40x128xf32>
    %9 = arith.truncf %8 : vector<40x128xf32> to vector<40x128xbf16>
    %10 = tpu.iota {dimensions = array<i32: 0>} : vector<40x1xi32>
    %c8_i32 = arith.constant 8 : i32
    %11 = arith.muli %arg1, %c8_i32 : i32
    %c16_i32 = arith.constant 16 : i32
    %12 = arith.subi %11, %c16_i32 : i32
    %13 = vector.broadcast %12 : i32 to vector<40x1xi32>
    %14 = arith.addi %13, %10 : vector<40x1xi32>
    %c0_i32 = arith.constant 0 : i32
    %15 = vector.broadcast %c0_i32 : i32 to vector<40x1xi32>
    %16 = arith.cmpi sge, %14, %15 : vector<40x1xi32>
    %c20_i32 = arith.constant 20 : i32
    %17 = vector.broadcast %c20_i32 : i32 to vector<40x1xi32>
    %18 = arith.cmpi slt, %14, %17 : vector<40x1xi32>
    %19 = arith.andi %16, %18 : vector<40x1xi1>
    %cst_8 = arith.constant 0.000000e+00 : bf16
    %20 = vector.broadcast %cst_8 : bf16 to vector<40x128xbf16>
    %21 = vector.shape_cast %19 : vector<40x1xi1> to vector<40x1xi1>
    %22 = vector.broadcast %21 : vector<40x1xi1> to vector<40x128xi1>
    %23 = arith.select %22, %9, %20 : vector<40x128xi1>, vector<40x128xbf16>
    %24 = vector.extract_strided_slice %23 {offsets = [11, 0], sizes = [8, 128], strides = [1, 1]} : vector<40x128xbf16> to vector<8x128xbf16>
    %25 = vector.extract_strided_slice %23 {offsets = [12, 0], sizes = [8, 128], strides = [1, 1]} : vector<40x128xbf16> to vector<8x128xbf16>
    %26 = vector.extract_strided_slice %23 {offsets = [13, 0], sizes = [8, 128], strides = [1, 1]} : vector<40x128xbf16> to vector<8x128xbf16>
    %27 = vector.extract_strided_slice %23 {offsets = [14, 0], sizes = [8, 128], strides = [1, 1]} : vector<40x128xbf16> to vector<8x128xbf16>
    %28 = vector.extract_strided_slice %23 {offsets = [15, 0], sizes = [8, 128], strides = [1, 1]} : vector<40x128xbf16> to vector<8x128xbf16>
    %29 = vector.extract_strided_slice %23 {offsets = [16, 0], sizes = [8, 128], strides = [1, 1]} : vector<40x128xbf16> to vector<8x128xbf16>
    %30 = vector.extract_strided_slice %23 {offsets = [17, 0], sizes = [8, 128], strides = [1, 1]} : vector<40x128xbf16> to vector<8x128xbf16>
    %31 = vector.extract_strided_slice %23 {offsets = [18, 0], sizes = [8, 128], strides = [1, 1]} : vector<40x128xbf16> to vector<8x128xbf16>
    %32 = vector.extract_strided_slice %23 {offsets = [19, 0], sizes = [8, 128], strides = [1, 1]} : vector<40x128xbf16> to vector<8x128xbf16>
    %33 = vector.extract_strided_slice %23 {offsets = [20, 0], sizes = [8, 128], strides = [1, 1]} : vector<40x128xbf16> to vector<8x128xbf16>
    %34 = vector.extract_strided_slice %23 {offsets = [21, 0], sizes = [8, 128], strides = [1, 1]} : vector<40x128xbf16> to vector<8x128xbf16>
    %35 = tpu.concatenate %24, %25, %26, %27, %28, %29, %30, %31, %32, %33, %34 in 1 : vector<8x128xbf16>, vector<8x128xbf16>, vector<8x128xbf16>, vector<8x128xbf16>, vector<8x128xbf16>, vector<8x128xbf16>, vector<8x128xbf16>, vector<8x128xbf16>, vector<8x128xbf16>, vector<8x128xbf16>, vector<8x128xbf16> -> vector<8x1408xbf16>
    %c0_9 = arith.constant 0 : index
    %c0_10 = arith.constant 0 : index
    %36 = vector.load %arg5[%c0_9, %c0_10] : memref<1408x128xbf16, #tpu.memory_space<vmem>>, vector<1408x128xbf16>
    %cst_11 = arith.constant dense<0.000000e+00> : vector<8x128xf32>
    %37 = tpu.matmul %35, %36, %cst_11 {dimension_numbers = #tpu.dot_dimension_numbers<[1], [0], [0], [1], [0, 0, 1, 1], [], []>} : vector<8x1408xbf16>, vector<1408x128xbf16>, vector<8x128xf32> -> vector<8x128xf32>
    %c0_12 = arith.constant 0 : index
    %c0_13 = arith.constant 0 : index
    %38 = vector.load %arg6[%c0_12, %c0_13] : memref<1x128xf32, #tpu.memory_space<vmem>>, vector<1x128xf32>
    %39 = vector.broadcast %38 : vector<1x128xf32> to vector<8x128xf32>
    %40 = arith.addf %37, %39 : vector<8x128xf32>
    %cst_14 = arith.constant 0.000000e+00 : f32
    %41 = vector.broadcast %cst_14 : f32 to vector<8x128xf32>
    %42 = arith.maximumf %40, %41 : vector<8x128xf32>
    %43 = arith.truncf %42 : vector<8x128xf32> to vector<8x128xbf16>
    %c0_15 = arith.constant 0 : index
    %c0_16 = arith.constant 0 : index
    %44 = vector.load %arg7[%c0_15, %c0_16] : memref<128x128xbf16, #tpu.memory_space<vmem>>, vector<128x128xbf16>
    %cst_17 = arith.constant dense<0.000000e+00> : vector<8x128xf32>
    %45 = tpu.matmul %43, %44, %cst_17 {dimension_numbers = #tpu.dot_dimension_numbers<[1], [0], [0], [1], [0, 0, 1, 1], [], []>} : vector<8x128xbf16>, vector<128x128xbf16>, vector<8x128xf32> -> vector<8x128xf32>
    %c0_18 = arith.constant 0 : index
    %c0_19 = arith.constant 0 : index
    %46 = vector.load %arg8[%c0_18, %c0_19] : memref<1x128xf32, #tpu.memory_space<vmem>>, vector<1x128xf32>
    %47 = vector.broadcast %46 : vector<1x128xf32> to vector<8x128xf32>
    %48 = arith.addf %45, %47 : vector<8x128xf32>
    %49 = vector.extract_strided_slice %1 {offsets = [16, 0], sizes = [8, 128], strides = [1, 1]} : vector<40x128xbf16> to vector<8x128xbf16>
    %c0_20 = arith.constant 0 : index
    %c0_21 = arith.constant 0 : index
    %50 = vector.load %arg9[%c0_20, %c0_21] : memref<128x128xbf16, #tpu.memory_space<vmem>>, vector<128x128xbf16>
    %cst_22 = arith.constant dense<0.000000e+00> : vector<8x128xf32>
    %51 = tpu.matmul %49, %50, %cst_22 {dimension_numbers = #tpu.dot_dimension_numbers<[1], [0], [0], [1], [0, 0, 1, 1], [], []>} : vector<8x128xbf16>, vector<128x128xbf16>, vector<8x128xf32> -> vector<8x128xf32>
    %c0_23 = arith.constant 0 : index
    %c0_24 = arith.constant 0 : index
    %52 = vector.load %arg10[%c0_23, %c0_24] : memref<1x128xf32, #tpu.memory_space<vmem>>, vector<1x128xf32>
    %53 = vector.broadcast %52 : vector<1x128xf32> to vector<8x128xf32>
    %54 = arith.addf %51, %53 : vector<8x128xf32>
    %55 = arith.addf %48, %54 : vector<8x128xf32>
    %cst_25 = arith.constant 0.000000e+00 : f32
    %56 = vector.broadcast %cst_25 : f32 to vector<8x128xf32>
    %57 = arith.maximumf %55, %56 : vector<8x128xf32>
    %58 = arith.truncf %57 : vector<8x128xf32> to vector<8x128xbf16>
    %c0_26 = arith.constant 0 : index
    %c0_27 = arith.constant 0 : index
    %c0_28 = arith.constant 0 : index
    %59 = vector.load %arg11[%c0_26, %c0_27, %c0_28] : memref<1x8x128xbf16, #tpu.memory_space<vmem>>, vector<1x8x128xbf16>
    %60 = vector.shape_cast %59 : vector<1x8x128xbf16> to vector<8x128xbf16>
    %61 = vector.shape_cast %58 : vector<8x128xbf16> to vector<1x8x128xbf16>
    tpu.vector_store %arg11[%c0_26, %c0_27, %c0_28], %61 {strides = array<i32>} : memref<1x8x128xbf16, #tpu.memory_space<vmem>>, vector<1x8x128xbf16>,
    return
  }
  func.func @transform_0(%arg0: i32, %arg1: i32) -> (i32, i32, i32, i32) {
    %c0_i32 = arith.constant 0 : i32
    %c0_i32_0 = arith.constant 0 : i32
    %c0_i32_1 = arith.constant 0 : i32
    return %arg0, %arg1, %c0_i32, %c0_i32_0 : i32, i32, i32, i32
  }
  func.func @transform_1(%arg0: i32, %arg1: i32) -> (i32, i32) {
    %c0_i32 = arith.constant 0 : i32
    %c0_i32_0 = arith.constant 0 : i32
    %c0_i32_1 = arith.constant 0 : i32
    return %c0_i32, %c0_i32_0 : i32, i32
  }
  func.func @transform_2(%arg0: i32, %arg1: i32) -> (i32, i32) {
    %c0_i32 = arith.constant 0 : i32
    %c0_i32_0 = arith.constant 0 : i32
    %c0_i32_1 = arith.constant 0 : i32
    return %c0_i32, %c0_i32_0 : i32, i32
  }
  func.func @transform_3(%arg0: i32, %arg1: i32) -> (i32, i32) {
    %c0_i32 = arith.constant 0 : i32
    %c0_i32_0 = arith.constant 0 : i32
    %c0_i32_1 = arith.constant 0 : i32
    return %c0_i32, %c0_i32_0 : i32, i32
  }
  func.func @transform_4(%arg0: i32, %arg1: i32) -> (i32, i32) {
    %c0_i32 = arith.constant 0 : i32
    %c0_i32_0 = arith.constant 0 : i32
    %c0_i32_1 = arith.constant 0 : i32
    return %c0_i32, %c0_i32_0 : i32, i32
  }
  func.func @transform_5(%arg0: i32, %arg1: i32) -> (i32, i32) {
    %c0_i32 = arith.constant 0 : i32
    %c0_i32_0 = arith.constant 0 : i32
    %c0_i32_1 = arith.constant 0 : i32
    return %c0_i32, %c0_i32_0 : i32, i32
  }
  func.func @transform_6(%arg0: i32, %arg1: i32) -> (i32, i32) {
    %c0_i32 = arith.constant 0 : i32
    %c0_i32_0 = arith.constant 0 : i32
    %c0_i32_1 = arith.constant 0 : i32
    return %c0_i32, %c0_i32_0 : i32, i32
  }
  func.func @transform_7(%arg0: i32, %arg1: i32) -> (i32, i32) {
    %c0_i32 = arith.constant 0 : i32
    %c0_i32_0 = arith.constant 0 : i32
    %c0_i32_1 = arith.constant 0 : i32
    return %c0_i32, %c0_i32_0 : i32, i32
  }
  func.func @transform_8(%arg0: i32, %arg1: i32) -> (i32, i32) {
    %c0_i32 = arith.constant 0 : i32
    %c0_i32_0 = arith.constant 0 : i32
    %c0_i32_1 = arith.constant 0 : i32
    return %c0_i32, %c0_i32_0 : i32, i32
  }
  func.func @transform_9(%arg0: i32, %arg1: i32) -> (i32, i32, i32) {
    %c0_i32 = arith.constant 0 : i32
    %c0_i32_0 = arith.constant 0 : i32
    return %arg0, %arg1, %c0_i32 : i32, i32, i32
  }
}

</mosaic_0001>

<bundles_post_ra>
// kernel: tpu_custom_call.1
= control target key start
LH: loop header
LB: loop body
LE: loop exit
PB: predicated region body
PF: predicated region fallthrough
CT: control target
= control target key end

     0   :  { %s3399_s0 = inlined_call_operand.hbm [shape: bf16[2,3,40,128], index: 0, kind: input, shape index: {}]   ;;  %s3400_s1 = inlined_call_operand.hbm [shape: bf16[128,128], index: 1, kind: input, shape index: {}]   ;;  %s3401_s2 = inlined_call_operand.vmem [shape: f32[1,128], index: 2, kind: input, shape index: {}]   ;;  %s3402_s3 = inlined_call_operand.hbm [shape: bf16[1408,128], index: 3, kind: input, shape index: {}]   ;;  %s3403_s4 = inlined_call_operand.vmem [shape: f32[1,128], index: 4, kind: input, shape index: {}]   ;;  %s3404_s5 = inlined_call_operand.hbm [shape: bf16[128,128], index: 5, kind: input, shape index: {}]   ;;  %s3405_s6 = inlined_call_operand.vmem [shape: f32[1,128], index: 6, kind: input, shape index: {}]   ;;  %s3406_s7 = inlined_call_operand.hbm [shape: bf16[128,128], index: 7, kind: input, shape index: {}]   ;;  %s3407_s8 = inlined_call_operand.vmem [shape: f32[1,128], index: 8, kind: input, shape index: {}]   ;;  %s3408_s9 = inlined_call_operand.hbm [shape: bf16[2,24,128], index: 9, kind: output, shape index: {}]  }
   0x1   :  { %3420 = sst [smem:[#allocation22_spill]] %s3400_s1 }
   0x2   :  { %3421 = sst [smem:[#allocation23_spill]] %s3402_s3 }
   0x3   :  { %3422 = sst [smem:[#allocation24_spill]] %s3404_s5 }
   0x4   :  { %3423 = sst [smem:[#allocation25_spill]] %s3405_s6 }
   0x5   :  { %3424 = sst [smem:[#allocation26_spill]] %s3406_s7 }
   0x6   :  { %3425 = sst [smem:[#allocation27_spill]] %s3408_s9 }
   0x7   :  { %14 = vsyncpa [#allocation3], 0 }
   0x8   :  { %16 = vsyncpa [#allocation3 + $0x1], 0 }
   0x9   :  { %17 = vsyncpa [#allocation6], 0 }
   0xa   :  { %18 = vsyncpa [#allocation9], 0 }
   0xb   :  { %19 = vsyncpa [#allocation4], 0 }
   0xc   :  { %21 = vsyncpa [#allocation4 + $0x1], 0  ;;  %s3061_s30 = smov 0   ;;  %s3063_s10 = smov 0  }
   0xd   :  { %s3065_s11 = smov 0   ;;  %s3067_s12 = smov 0  }
   0xe   :  { %s3069_s13 = smov 0   ;;  %s3071_s14 = smov 0  }
   0xf   :  { %s3073_s15 = smov 0   ;;  %s3075_s16 = smov 0  }
  0x10 LB: > { %3426 = sst [smem:[#allocation16_spill]] %s2970_s30  ;;  %s2139_s17 = sadd.s32 4294967295, %s2998_s16   ;;  %s2998_s16 = sphi %s3075_s16, %s27_s16   ;;  %s2994_s15 = sphi %s3073_s15, %s3462_s15   ;;  %s2990_s14 = sphi %s3071_s14, %s3461_s14   ;;  %s2986_s13 = sphi %s3069_s13, %s3460_s13   ;;  %s2982_s12 = sphi %s3067_s12, %s3459_s12   ;;  %s2978_s11 = sphi %s3065_s11, %s3458_s11   ;;  %s2974_s10 = sphi %s3063_s10, %s3457_s10   ;;  %s2970_s30 = sphi %s3061_s30, %s3456_s30  }
  0x11   : > { %3427 = sst [smem:[#allocation17_spill]] %s2998_s16  ;;  %s2140_s18 = sadd.s32 4294967294, %s2998_s16  }
  0x12   : > { %p61_p0 = scmp.ne.s32.totalorder %s2974_s10, %s2970_s30  ;;  %p3105_p1 = scmp.eq.s32.totalorder %s2139_s17, 0 }
  0x13   : > { %p3109_p2 = scmp.eq.s32.totalorder %s2139_s17, 5  ;;  %p261_p3 = scmp.eq.s32.totalorder %s2140_s18, 5 }
  0x14   : > { %p3115_p4 = por %p3105_p1, %p61_p0  ;;  %p2141_p5 = scmp.ge.s32.totalorder %s2998_s16, 1 }
  0x15   : > { %p3120_p6 = por %p261_p3, %p61_p0  ;;  %p268_p7 = scmp.lt.s32.totalorder %s2998_s16, 7 }
  0x16   : > { %s3000_s24 = smov [#allocation5]   ;;  %s3001_s27 = smov [#allocation8]  }
  0x17   : > { %s3431_s22 = scalar_select %p3120_p6, 1, 0 }
  0x18   : > { %p3125_p8 = pnand %p2141_p5, %p268_p7  ;;  %s280_s25 = sshll.u32 %s3000_s24, 4  ;;  %s281_s25 = int_to_ptr.vmem [resolvable:$true] %s280_s25 }
  0x19   : > { %3432 = sst [smem:[#allocation18_spill]] %s3431_s22  ;;  %s312_s28 = sshll.u32 %s3001_s27, 4  ;;  %s313_s28 = int_to_ptr.vmem [resolvable:$true] %s312_s28 }
  0x1a   : > { %p2542_p9 = pneg %p3125_p8  ;;  %s3002_s29 = smov [#allocation7]  }
  0x1b   : > { %s296_s17 = sshll.u32 %s3002_s29, 4  ;;  %s2773_s18 = scalar_lea.vmem %s281_s25, 1024  ;;  %s297_s17 = int_to_ptr.vmem [resolvable:$true] %s296_s17 }
  0x1c   : > { %p3133_p10 = pnand %p2542_p9, %p3105_p1  ;;  %p2774_p12 = scmp.ne.s32.totalorder %s281_s25, %s2773_s18 }
  0x1d   : > { %p2781_p3 = scmp.lt.s32.totalorder %s281_s25, %s281_s25  ;;  %p2782_p5 = scmp.lt.s32.totalorder %s2773_s18, %s2773_s18 }
  0x1e   : > { %p2764_p11 = pneg %p3133_p10 }
  0x1f   : > { %p2783_p7 = por %p2782_p5, %p2781_p3 }
  0x20   : > { %p2776_p13 = pnand %p2774_p12, %p2764_p11 }
  0x22   : > { %p2777_p0 = pneg %p2776_p13 }
  0x24   : > { %p2784_p9 = pnand %p2783_p7, %p2777_p0 }
  0x26   : > { %2787 = shalt.err (!%p2784_p9)
}
  0x27   : > { %s3412_s24 = smov 64   ;;  %s3413_s27 = smov 4  }
  0x28   : > { %s3435_s1 = sld [smem:[#allocation22_spill]]  ;;  %s2799_s30 = scalar_lea.vmem %s313_s28, 1024 }
  0x29   : > { %p2800_p12 = scmp.ne.s32.totalorder %s313_s28, %s2799_s30  ;;  %p2807_p0 = scmp.lt.s32.totalorder %s313_s28, %s313_s28 }
  0x2a   : > { %p2808_p5 = scmp.lt.s32.totalorder %s2799_s30, %s2799_s30 }
  0x2b   : > { %p2802_p13 = pnand %p2800_p12, %p2764_p11 }
  0x2c   : > { %p2809_p7 = por %p2808_p5, %p2807_p0 }
  0x2d   : > { %p2803_p3 = pneg %p2802_p13 }
  0x2e   : > { %2545 = dma.hbm_to_vmem [thread:$0]  (!%p3133_p10), %s3435_s1, 1024, %s281_s25, [#allocation6], %s3412_s24, %s3412_s24, %s3413_s27  }
  0x2f   : > { %p2810_p9 = pnand %p2809_p7, %p2803_p3 }
  0x31   : > { %2813 = shalt.err (!%p2810_p9)
}
  0x32   : > { %s3436_s5 = sld [smem:[#allocation24_spill]]  ;;  %s2825_s22 = scalar_lea.vmem %s297_s17, 11264 }
  0x33   : > { %p2826_p6 = scmp.ne.s32.totalorder %s297_s17, %s2825_s22  ;;  %p2833_p0 = scmp.lt.s32.totalorder %s297_s17, %s297_s17 }
  0x34   : > { %p2834_p3 = scmp.lt.s32.totalorder %s2825_s22, %s2825_s22 }
  0x35   : > { %p2828_p12 = pnand %p2826_p6, %p2764_p11 }
  0x36   : > { %p2835_p5 = por %p2834_p3, %p2833_p0 }
  0x37   : > { %p2829_p13 = pneg %p2828_p12 }
  0x38   : > { %2551 = dma.hbm_to_vmem [thread:$0]  (!%p3133_p10), %s3436_s5, 1024, %s313_s28, [#allocation9], %s3412_s24, %s3412_s24, %s3413_s27  }
  0x39   : > { %p2836_p7 = pnand %p2835_p5, %p2829_p13 }
  0x3b   : > { %2839 = shalt.err (!%p2836_p7)
}
  0x3c   : > { %s3437_s3 = sld [smem:[#allocation23_spill]]  ;;  %s3005_s25 = smov [#allocation10]  }
  0x3d   : > { %s328_s28 = sshll.u32 %s3005_s25, 4  ;;  %s329_s28 = int_to_ptr.vmem [resolvable:$true] %s328_s28 }
  0x3e   : > { %s2851_s29 = scalar_lea.vmem %s329_s28, 1024  ;;  %p2859_p13 = scmp.lt.s32.totalorder %s329_s28, %s329_s28 }
  0x3f   : > { %p2852_p6 = scmp.ne.s32.totalorder %s329_s28, %s2851_s29  ;;  %p2860_p0 = scmp.lt.s32.totalorder %s2851_s29, %s2851_s29 }
  0x41   : > { %p2854_p9 = pnand %p2852_p6, %p2764_p11  ;;  %p2861_p3 = por %p2860_p0, %p2859_p13 }
  0x42   : > { %2548 = dma.hbm_to_vmem [thread:$0]  (!%p3133_p10), %s3437_s3, 11264, %s297_s17, [#allocation6], %s3412_s24, %s3412_s24, %s3413_s27  }
  0x43   : > { %p2855_p12 = pneg %p2854_p9 }
  0x45   : > { %p2862_p5 = pnand %p2861_p3, %p2855_p12 }
  0x47   : > { %2865 = shalt.err (!%p2862_p5)
}
  0x48   : > { %s3438_s7 = sld [smem:[#allocation26_spill]]  ;;  %s36_s22 = sadd.s32 1, %s2990_s14 }
  0x49   : > { %s39_s26 = sadd.s32 1, %s2994_s15  ;;  %p37_p11 = scmp.ge.s32.totalorder %s36_s22, 3 }
  0x4a   : > { %s48_s9 = sadd.s32 1, %s2978_s11  ;;  %p55_p7 = scmp.ne.s32.totalorder %s2978_s11, %s2974_s10 }
  0x4b   : > { %p56_p6 = scmp.eq.s32.totalorder %s2998_s16, 0  ;;  %s3464_s22 = smov (%p37_p11, %s36_s22), 0 }
  0x4c   : > { %3439 = sst [smem:[#allocation19_spill]] %s3464_s22  ;;  %s3466_s26 = smov (!%p37_p11, %s39_s26), %s2994_s15 }
  0x4d   : > { %s44_s30 = ssub.s32 %s2990_s14, %s3464_s22  ;;  %p3194_p9 = por %p56_p6, %p55_p7 }
  0x4e   : > { %2554 = dma.hbm_to_vmem [thread:$0]  (!%p3133_p10), %s3438_s7, 1024, %s329_s28, [#allocation9], %s3412_s24, %s3412_s24, %s3413_s27  }
  0x4f   : > { %p41_p10 = scmp.ge.s32.totalorder %s3466_s26, 2  ;;  %p3200_p12 = por %p3109_p2, %p55_p7 }
  0x50   : > { %p2567_p13 = scmp.lt.s32.totalorder %s2998_s16, 6  ;;  %s345_s29 = sand.u32 1, %s2978_s11  }
  0x51   : > { %s3441_s28 = scalar_select %p3200_p12, 1, 0 }
  0x52   : > { %s3468_s26 = smov (%p41_p10, %s3466_s26), 0  ;;  %s2517_s17 = smul.u32 20, %s345_s29 }
  0x53   : > { %3442 = sst [smem:[#allocation20_spill]] %s3441_s28  ;;  %s43_s18 = ssub.s32 %s2994_s15, %s3468_s26 }
  0x54   : > { %3443 = sst [smem:[#allocation21_spill]] %s3468_s26  ;;  %s2518_s24 = smul.u32 5, %s2990_s14 }
  0x55   : > { %s45_s27 = sor.u32 %s44_s30, %s43_s18  ;;  %s2519_s1 = smul.u32 15, %s2994_s15 }
  0x56   : > { %p46_p0 = scmp.eq.s32.totalorder %s45_s27, 0  ;;  %s349_s3 = scalar_lea.vmem [#allocation2], %s2517_s17 }
  0x57   : > { %s358_s5 = sshll.u32 %s349_s3, 4  ;;  %p3214_p3 = pnand %p2567_p13, %p3194_p9  ;;  %s359_s5 = int_to_ptr.vmem [resolvable:$true] %s358_s5 }
  0x58   : > { %s3219_s7 = scalar_select %p46_p0, %s2978_s11, %s48_s9  }
  0x59   : > { %s355_s22 = sadd.s32 %s2519_s1, %s2518_s24  ;;  %s346_s30 = scalar_lea.sflag [#allocation3], %s345_s29 }
  0x5a   : > { %s2147_s16 = sshll.u32 %s355_s22, 6  ;;  %p2868_p2 = pneg %p3214_p3 }
  0x5b   : > { %s357_s26 = scalar_lea.hbm %s3399_s0, %s2147_s16  ;;  %s2879_s27 = scalar_lea.vmem %s359_s5, 320 }
  0x5c   : > { %p2880_p5 = scmp.ne.s32.totalorder %s359_s5, %s2879_s27  ;;  %s3006_s3 = smov [#allocation2]  }
  0x5d   : > { %s2884_s25 = sshll.u32 %s3006_s3, 4  ;;  %s2885_s25 = int_to_ptr.vmem [resolvable:$false] %s2884_s25 }
  0x5e   : > { %p2882_p11 = pnand %p2880_p5, %p2868_p2  ;;  %s2886_s17 = scalar_lea.vmem %s2885_s25, 640 }
  0x5f   : > { %p2887_p6 = scmp.lt.s32.totalorder %s359_s5, %s2885_s25  ;;  %p2888_p9 = scmp.lt.s32.totalorder %s2886_s17, %s2879_s27 }
  0x60   : > { %p2883_p7 = pneg %p2882_p11 }
  0x61   : > { %p2889_p10 = por %p2888_p9, %p2887_p6 }
  0x63   : > { %p2890_p13 = pnand %p2889_p10, %p2883_p7 }
  0x65   : > { %2893 = shalt.err (!%p2890_p13)
}
  0x66   : > { %s3445_s1 = smov 4   ;;  %s3446_s6 = smov 64  }
  0x67   : > { %2558 = dma.hbm_to_vmem [thread:$0]  (!%p3214_p3), %s357_s26, 320, %s359_s5, %s346_s30, %s3446_s6, %s3446_s6, %s3445_s1  }
  0x68   : > { %370 = sbr.rel (%p3125_p8) target bundleno = 856 (0x358), region = 56  ;;  %s3234_s16 = sand.u32 (!%p3125_p8), 1, %s2974_s10  }
  0x69   : > { %s2520_s24 = smul.u32 (!%p3125_p8), 20, %s3234_s16  ;;  %s373_s22 = scalar_lea.sflag (!%p3125_p8), [#allocation3], %s3234_s16 }
  0x6b   : > { %s3238_s9 = scalar_lea.vmem (!%p3125_p8), [#allocation2], %s2520_s24 }
  0x6d   : > { %2953 = dma.done.wait (%p3115_p4), %s373_s22, 320  }
  0x6e   : > { %2955 = vsyncadd (%p3115_p4), %s373_s22, 4294966976 }
  0x6f   : > { %2957 = dma.done.wait (%p3105_p1), [#allocation6], 12288  }
  0x70   : > { %2959 = vsyncadd (%p3105_p1), [#allocation6], 4294955008 }
  0x71   : > { %2961 = dma.done.wait (%p3105_p1), [#allocation9], 2048  }
  0x72   : > { %2963 = vsyncadd (%p3105_p1), [#allocation9], 4294965248  ;;  %v3007_v0 = vmov 0.0   ;;  %vm3008_vm0 = vmmov 0   ;;  %v2646_v1 = vld [vmem:[#allocation5 + $0x38] sm:$0xff]   ;;  %v2647_v2 = vld [vmem:[#allocation5 + $0x30] sm:$0xff]   ;;  %v583_v48 = vlaneseq }
  0x73   : > { %2429 = vmatprep.subr.bf16.mxu0 %v3007_v0  ;;  %2445 = vmatprep.mubr.msk.bf16.mxu0 %vm3008_vm0, %v3007_v0  ;;  %v2648_v3 = vld [vmem:[#allocation5 + $0x28] sm:$0xff]   ;;  %v2649_v4 = vld [vmem:[#allocation5 + $0x20] sm:$0xff]   ;;  %v2650_v5 = vld [vmem:[#allocation5 + $0x18] sm:$0xff]   ;;  %s2166_s5 = sshll.u32 %s2982_s12, 3  ;;  %v3009_v60 = vmov 0   ;;  %s2521_s20 = smul.u32 3, %s2986_s13 }
  0x74   : > { %2430 = vmatpush3.bf16.msra.mxu0 %v2646_v1  ;;  %v2651_v6 = vld [vmem:[#allocation5 + $0x10] sm:$0xff]   ;;  %v2652_v7 = vld [vmem:[#allocation5 + $0x8] sm:$0xff]   ;;  %v2653_v8 = vld [vmem:[#allocation5] sm:$0xff]   ;;  %v584_v49 = vshrl.u32 %v583_v48, 7  ;;  %s2167_s19 = sadd.s32 4294967280, %s2166_s5  ;;  %s3447_s3 = sld [smem:[#allocation25_spill]] }
  0x75   : > { %2431 = vmatprep.subr.bf16.mxu0 %v3007_v0  ;;  %v2654_v9 = vld [vmem:[%s3238_s9] sm:$0xff]   ;;  %v432_v10 = vld [vmem:[%s3238_s9 + $0x8] sm:$0xf]  ;;  %v433_v11 = vld [vmem:[%s3238_s9 + $0xc] sm:$0xf]  ;;  %v590_v51 = vstv %s2167_s19  ;;  %s2153_s25 = sshll.u32 %s3234_s16, 2  ;;  %s2011_s17 = sadd.s32 %s2982_s12, %s2521_s20 }
  0x76   : > { %v2156_v12 = vcombine.low %v432_v10, %v433_v11  ;;  %v2656_v13 = vld [vmem:[#allocation7 + $0x78] sm:$0xff]   ;;  %v2660_v17 = vld [vmem:[#allocation7 + $0x70] sm:$0xff]   ;;  %v2664_v21 = vld [vmem:[#allocation7 + $0x68] sm:$0xff]   ;;  %v585_v50 = vadd.s32 8, %v584_v49  ;;  %v591_v52 = vadd.s32 %v590_v51, %v584_v49  ;;  %v586_v54 = vadd.s32 16, %v584_v49  ;;  %s2278_s6 = sshll.u32 %s2011_s17, 6 }
  0x77   : > { %v2657_v14 = vld [vmem:[#allocation7 + $0x38] sm:$0xff]   ;;  %2292 = vmatprep.subr.bf16.mxu1 %v2656_v13  ;;  %v2661_v18 = vld [vmem:[#allocation7 + $0x30] sm:$0xff]   ;;  %v2665_v22 = vld [vmem:[#allocation7 + $0x28] sm:$0xff]   ;;  %v587_v55 = vadd.s32 24, %v584_v49  ;;  %s426_s24 = scalar_lea.vmem [#allocation11], %s2153_s25  ;;  %s3449_s5 = sld [smem:[#allocation27_spill]] }
  0x78   : > { %2432 = vmatpush3.bf16.msra.mxu0 %v2647_v2  ;;  %v2658_v15 = vld [vmem:[#allocation7 + $0xf8] sm:$0xff]   ;;  %2293 = vmatpush3.bf16.msra.mxu1 %v2657_v14  ;;  %v2662_v19 = vld [vmem:[#allocation7 + $0xf0] sm:$0xff]   ;;  %v2666_v23 = vld [vmem:[#allocation7 + $0xe8] sm:$0xff]   ;;  %v592_v53 = vadd.s32 %v590_v51, %v585_v50  ;;  %vm595_vm1 = vcmp.ge.s32.totalorder %v591_v52, 0  ;;  %vm599_vm2 = vcmp.lt.s32.totalorder %v591_v52, 20  ;;  %v593_v56 = vadd.s32 %v590_v51, %v586_v54  ;;  %s2015_s22 = sshll.u32 %s426_s24, 4  ;;  %s2016_s22 = int_to_ptr.vmem [resolvable:$true] %s2015_s22 }
  0x79   : > { %2433 = vmatprep.subr.bf16.mxu0 %v3007_v0  ;;  %v2659_v16 = vld [vmem:[#allocation7 + $0xb8] sm:$0xff]   ;;  %2294 = vmatprep.subr.bf16.mxu1 %v2660_v17  ;;  %v2663_v20 = vld [vmem:[#allocation7 + $0xb0] sm:$0xff]   ;;  %v2667_v24 = vld [vmem:[#allocation7 + $0xa8] sm:$0xff]   ;;  %v594_v57 = vadd.s32 %v590_v51, %v587_v55  ;;  %s2000_s21 = scalar_lea.sflag [#allocation4], %s3234_s16  ;;  %s2894_s23 = scalar_lea.vmem %s2016_s22, 64 }
  0x7a   : > { %v2668_v25 = vld [vmem:[#allocation7 + $0x60] sm:$0xff]   ;;  %v2672_v29 = vld [vmem:[#allocation7 + $0x58] sm:$0xff]   ;;  %v2676_v33 = vld [vmem:[#allocation7 + $0x50] sm:$0xff]   ;;  %vm596_vm3 = vcmp.ge.s32.totalorder %v592_v53, 0  ;;  %vm600_vm4 = vcmp.lt.s32.totalorder %v592_v53, 20  ;;  %vm597_vm9 = vcmp.ge.s32.totalorder %v593_v56, 0  ;;  %p2895_p1 = scmp.ne.s32.totalorder %s2016_s22, %s2894_s23 }
  0x7b   : > { %v2669_v26 = vld [vmem:[#allocation7 + $0x20] sm:$0xff]   ;;  %v2673_v30 = vld [vmem:[#allocation7 + $0x18] sm:$0xff]   ;;  %v2677_v34 = vld [vmem:[#allocation7 + $0x10] sm:$0xff]   ;;  %vm601_vm10 = vcmp.lt.s32.totalorder %v593_v56, 20  ;;  %vm598_vm11 = vcmp.ge.s32.totalorder %v594_v57, 0  ;;  %vm602_vm12 = vcmp.lt.s32.totalorder %v594_v57, 20 }
  0x7c   : > { %2434 = vmatpush3.bf16.msra.mxu0 %v2648_v3  ;;  %2295 = vmatpush3.bf16.msra.mxu1 %v2661_v18  ;;  %v2670_v27 = vld [vmem:[#allocation7 + $0xe0] sm:$0xff]   ;;  %v2674_v31 = vld [vmem:[#allocation7 + $0xd8] sm:$0xff]   ;;  %v2678_v35 = vld [vmem:[#allocation7 + $0xd0] sm:$0xff]   ;;  %p2896_p4 = pnand %p2895_p1, %p3200_p12  ;;  %s3010_s12 = smov [#allocation11]  }
  0x7d   : > { %2435 = vmatprep.subr.bf16.mxu0 %v3007_v0  ;;  %2296 = vmatprep.subr.bf16.mxu1 %v2664_v21  ;;  %v2671_v28 = vld [vmem:[#allocation7 + $0xa0] sm:$0xff]   ;;  %v2675_v32 = vld [vmem:[#allocation7 + $0x98] sm:$0xff]   ;;  %v2679_v36 = vld [vmem:[#allocation7 + $0x90] sm:$0xff]   ;;  %s2013_s19 = scalar_lea.hbm %s3449_s5, %s2278_s6  ;;  %s2898_s26 = sshll.u32 %s3010_s12, 4  ;;  %s2899_s26 = int_to_ptr.vmem [resolvable:$false] %s2898_s26 }
  0x7e   : > { %v2680_v37 = vld [vmem:[#allocation7 + $0x48] sm:$0xff]   ;;  %v2685_v42 = vld [vmem:[#allocation7 + $0x40] sm:$0xff]   ;;  %v2689_v46 = vld [vmem:[#allocation7 + $0x178] sm:$0xff]   ;;  %p2897_p8 = pneg %p2896_p4  ;;  %s2900_s28 = scalar_lea.vmem %s2899_s26, 128 }
  0x7f   : > { %v2681_v38 = vld [vmem:[%s3238_s9 + $0x10] ss:$0 sps:$4 sm:$0xff]   ;;  %v2687_v43 = vld [vmem:[#allocation7 + $0xc0] sm:$0xff]   ;;  %vm603_vm5 = vmand %vm595_vm1, %vm599_vm2  ;;  %p2901_p0 = scmp.lt.s32.totalorder %s2016_s22, %s2899_s26  ;;  %p2902_p3 = scmp.lt.s32.totalorder %s2900_s28, %s2894_s23 }
  0x80   : > { %2436 = vmatpush3.bf16.msra.mxu0 %v2649_v4  ;;  %2297 = vmatpush3.bf16.msra.mxu1 %v2665_v22  ;;  %v2682_v39 = vld [vmem:[#allocation7 + $0x8] sm:$0xff]   ;;  %v2686_v44 = vld [vmem:[#allocation7] sm:$0xff]   ;;  %v2691_v47 = vld [vmem:[#allocation7 + $0x1f8] sm:$0xff]  }
  0x81   : > { %2437 = vmatprep.subr.bf16.mxu0 %v3007_v0  ;;  %2298 = vmatprep.subr.bf16.mxu1 %v2668_v25  ;;  %v2683_v40 = vld [vmem:[#allocation7 + $0xc8] sm:$0xff]   ;;  %v2688_v45 = vld [vmem:[#allocation7 + $0x80] sm:$0xff]   ;;  %vm604_vm6 = vmand %vm596_vm3, %vm600_vm4  ;;  %vm633_vm4 = vsmask.f32 7424  ;;  %p2903_p2 = por %p2902_p3, %p2901_p0 }
  0x82   : > { %v2684_v41 = vld [vmem:[#allocation7 + $0x88] sm:$0xff]   ;;  %vm615_vm7 = vmpackc.low %vm603_vm5, %vm603_vm5  ;;  %v2154_v58 = vld [vmem:[%s3401_s2] ss:$0 sm:$0xff]  ;;  %vm651_vm5 = vcmask 1046528  }
  0x83   : > { %vm616_vm8 = vmpackc.low %vm604_vm6, %vm604_vm6  ;;  %v619_v61 = vsel %vm615_vm7, 65537, %v3009_v60  ;;  %vm655_vm6 = vsmask.f32 6400  ;;  %vm862_vm7 = vsmask.f32 2304  ;;  %p2904_p5 = pnand %p2903_p2, %p2897_p8 }
  0x84   : > { %2438 = vmatpush3.bf16.msra.mxu0 %v2650_v5  ;;  %2299 = vmatpush3.bf16.msra.mxu1 %v2669_v26  ;;  %v620_v62 = vsel %vm616_vm8, 65537, %v3009_v60  ;;  %vm605_vm13 = vmand %vm597_vm9, %vm601_vm10  ;;  %vm663_vm8 = vcmask 1045504  }
  0x85   : > { %2439 = vmatprep.subr.bf16.mxu0 %v3007_v0  ;;  %2300 = vmatprep.subr.bf16.mxu1 %v2672_v29  ;;  %vm606_vm14 = vmand %vm598_vm11, %vm602_vm12  ;;  %v2168_v3 = vcombine.low %v619_v61, %v620_v62 }
  0x86   : > { %vm617_vm15 = vmpackc.low %vm605_vm13, %vm605_vm13 }
  0x87   : > { %vm618_vm1 = vmpackc.low %vm606_vm14, %vm606_vm14  ;;  %vm629_vm2 = vcmp.ne.s16.totalorder %v2168_v3, 0  ;;  %v621_v10 = vsel %vm617_vm15, 65537, %v3009_v60 }
  0x88   : > { %2440 = vmatpush3.bf16.msra.mxu0 %v2651_v6  ;;  %2301 = vmatpush3.bf16.msra.mxu1 %v2673_v30  ;;  %v622_v11 = vsel %vm618_vm1, 65537, %v3009_v60 }
  0x89   : > { %2441 = vmatprep.subr.bf16.mxu0 %v3007_v0  ;;  %2302 = vmatprep.subr.bf16.mxu1 %v2676_v33 }
  0x8c   : > { %2442 = vmatpush3.bf16.msra.mxu0 %v2652_v7  ;;  %2303 = vmatpush3.bf16.msra.mxu1 %v2677_v34 }
  0x8d   : > { %2443 = vmatprep.subr.bf16.mxu0 %v3007_v0  ;;  %2304 = vmatprep.subr.bf16.mxu1 %v2680_v37 }
  0x90   : > { %2444 = vmatpush3.bf16.msra.mxu0 %v2653_v8  ;;  %2305 = vmatpush3.bf16.msra.mxu1 %v2682_v39 }
  0x91   : > { %2314 = vmatprep.subr.bf16.mxu0 %v2658_v15  ;;  %2306 = vmatprep.subr.bf16.mxu1 %v2685_v42 }
  0x93   : > { %2446 = vmatmul.mubr.bf16.vlgmr.msra.gmra.mxu0 %v2654_v9 }
  0x94   : > { %2449 = vmatprep.mubr.msk.bf16.mxu0 %vm3008_vm0, %v3007_v0  ;;  %2315 = vmatpush3.bf16.msra.mxu0 %v2659_v16  ;;  %v2169_v16 = vcombine.low %v621_v10, %v622_v11  ;;  %v2690_v10 = vld [vmem:[#allocation7 + $0x138] sm:$0xff]  }
  0x95   : > { %2316 = vmatprep.subr.bf16.mxu0 %v2662_v19  ;;  %2307 = vmatpush3.bf16.msra.mxu1 %v2686_v44 }
  0x96   : > { %2336 = vmatprep.subr.bf16.mxu1 %v2689_v46  ;;  %vm630_vm3 = vcmp.ne.s16.totalorder %v2169_v16, 0 }
  0x98   : > { %2317 = vmatpush3.bf16.msra.mxu0 %v2663_v20 }
  0x99   : > { %2318 = vmatprep.subr.bf16.mxu0 %v2666_v23 }
  0x9b   : > { %2450 = vmatmul.mubr.bf16.gmra.mxu0 %v2156_v12 }
  0x9c   : > { %2453 = vmatprep.mubr.msk.bf16.mxu0 %vm3008_vm0, %v3007_v0  ;;  %2319 = vmatpush3.bf16.msra.mxu0 %v2667_v24 }
  0x9d   : > { %2320 = vmatprep.subr.bf16.mxu0 %v2670_v27 }
  0xa0   : > { %2321 = vmatpush3.bf16.msra.mxu0 %v2671_v28 }
  0xa1   : > { %2322 = vmatprep.subr.bf16.mxu0 %v2674_v31 }
  0xa3   : > { %2454 = vmatmul.mubr.bf16.gmra.mxu0 %v2681_v38 }
  0xa4   : > { %2323 = vmatpush3.bf16.msra.mxu0 %v2675_v32 }
  0xa5   : > { %2324 = vmatprep.subr.bf16.mxu0 %v2678_v35 }
  0xa8   : > { %2325 = vmatpush3.bf16.msra.mxu0 %v2679_v36 }
  0xa9   : > { %2326 = vmatprep.subr.bf16.mxu0 %v2683_v40 }
  0xac   : > { %2327 = vmatpush3.bf16.msra.mxu0 %v2684_v41 }
  0xad   : > { %2328 = vmatprep.subr.bf16.mxu0 %v2687_v43 }
  0xb0   : > { %2329 = vmatpush3.bf16.msra.mxu0 %v2688_v45 }
  0xb1   : > { %2358 = vmatprep.subr.bf16.mxu0 %v2691_v47 }
 0x153   : > { %v556_v59 = vpop.f32.mrf.mxu0 }
 0x154   : > { %v557_v1 = vadd.f32 %v2154_v58, %v556_v59 }
 0x155   : > { %v2447_v63 = vpop.f32.mrf.mxu0 }
 0x156   : > { %v577_v6 = vmax.f32 %v557_v1, 0.0 }
 0x157   : > { %v559_v2 = vpop.f32.mrf.mxu0 }
 0x158   : > { %v560_v4 = vadd.f32 %v2154_v58, %v559_v2 }
 0x159   : > { %v2448_v5 = vpop.f32.mrf.mxu0 }
 0x15a   : > { %v578_v7 = vmax.f32 %v560_v4, 0.0 }
 0x15b   : > { %v564_v8 = vpop.f32.mrf.mxu0 }
 0x15c   : > { %v581_v9 = vpack.c.bf16 %v578_v7, %v577_v6  ;;  %v565_v14 = vadd.f32 %v2154_v58, %v564_v8 }
 0x15d   : > { %v2451_v12 = vpop.f32.mrf.mxu0 }
 0x15e   : > { %v3274_v13 = vsel %vm629_vm2, %v581_v9, 0  ;;  %v579_v21 = vmax.f32 %v565_v14, 0.0 }
 0x15f   : > { %v567_v15 = vpop.f32.mrf.mxu0  ;;  %v635_v17 = vshrl.u32 %v3274_v13, 16  ;;  %v637_v18 = vshll.u32 %v3274_v13, 16  ;;  %v652_v33 = vrot.slane %v3274_v13, 1 }
 0x160   : > { %v568_v19 = vadd.f32 %v2154_v58, %v567_v15 }
 0x161   : > { %v2452_v20 = vpop.f32.mrf.mxu0  ;;  %v639_v23 = vrot.slane %v637_v18, 1  ;;  %v656_v24 = vrot.slane %v635_v17, 1  ;;  %v657_v25 = vrot.slane %v637_v18, 2  ;;  %v863_v28 = vrot.slane %v635_v17, 5 }
 0x162   : > { %v580_v22 = vmax.f32 %v568_v19, 0.0  ;;  %v864_v29 = vrot.slane %v637_v18, 6  ;;  %v2693_v19 = vld [vmem:[#allocation7 + $0x170] sm:$0xff]  }
 0x163   : > { %v640_v34 = vor.u32 %v639_v23, %v635_v17  ;;  %v658_v35 = vor.u32 %v657_v25, %v656_v24  ;;  %v2692_v25 = vld [vmem:[#allocation7 + $0x1b8] sm:$0xff]  }
 0x164   : > { %v582_v26 = vpack.c.bf16 %v580_v22, %v579_v21  ;;  %v865_v40 = vor.u32 %v864_v29, %v863_v28  ;;  %v2694_v29 = vld [vmem:[#allocation7 + $0x130] sm:$0xff]  }
 0x166   : > { %v3278_v27 = vsel %vm630_vm3, %v582_v26, 0 }
 0x167   : > { %v3281_v30 = vshll.u32 %v3278_v27, 16  ;;  %v3284_v31 = vshrl.u32 %v3278_v27, 16  ;;  %v653_v32 = vrot.slane %v3278_v27, 1 }
 0x169   : > { %v644_v36 = vrot.slane %v3281_v30, 1  ;;  %v866_v37 = vrot.slane %v3284_v31, 5  ;;  %v867_v38 = vrot.slane %v3281_v30, 6  ;;  %v659_v39 = vrot.slane %v3284_v31, 1 }
 0x16a   : > { %v660_v41 = vrot.slane %v3281_v30, 2  ;;  %v654_v42 = vsel %vm651_vm5, %v652_v33, %v653_v32  ;;  %v896_v43 = vshrl.u32 %v653_v32, 16  ;;  %v899_v47 = vshll.u32 %v653_v32, 16  ;;  %v2695_v32 = vld [vmem:[#allocation7 + $0x1f0] sm:$0xff]  }
 0x16b   : > { %v645_v44 = vsel %vm633_vm4, %v640_v34, %v644_v36  ;;  %v648_v45 = vor.u32 %v3284_v31, %v644_v36  ;;  %v888_v46 = vshrl.u32 %v654_v42, 16  ;;  %v891_v51 = vshll.u32 %v654_v42, 16  ;;  %v2697_v36 = vld [vmem:[#allocation7 + $0x168] sm:$0xff]  }
 0x16c   : > { %v871_v48 = vshrl.u32 %v645_v44, 16  ;;  %v874_v49 = vshll.u32 %v645_v44, 16  ;;  %v661_v50 = vor.u32 %v660_v41, %v659_v39  ;;  %v868_v54 = vor.u32 %v867_v38, %v866_v37  ;;  %v2696_v41 = vld [vmem:[#allocation7 + $0x1b0] sm:$0xff]   ;;  %v2698_v44 = vld [vmem:[#allocation7 + $0x128] sm:$0xff]  }
 0x16d   : > { %v879_v52 = vshrl.u32 %v648_v45, 16  ;;  %v882_v53 = vshll.u32 %v648_v45, 16  ;;  %v890_v55 = vrot.slane %v888_v46, 5  ;;  %v893_v4 = vrot.slane %v891_v51, 6  ;;  %v2699_v46 = vld [vmem:[#allocation7 + $0x1e8] sm:$0xff]   ;;  %v2703_v51 = vld [vmem:[#allocation7 + $0x1e0] sm:$0xff]  }
 0x16e   : > { %v873_v56 = vrot.slane %v871_v48, 5  ;;  %v876_v57 = vrot.slane %v874_v49, 6  ;;  %v662_v58 = vsel %vm655_vm6, %v658_v35, %v661_v50  ;;  %v913_v59 = vshrl.u32 %v661_v50, 16  ;;  %v2700_v49 = vld [vmem:[#allocation7 + $0x1a8] sm:$0xff]  }
 0x16f   : > { %v881_v60 = vrot.slane %v879_v52, 5  ;;  %v884_v61 = vrot.slane %v882_v53, 6  ;;  %v905_v62 = vshrl.u32 %v662_v58, 16  ;;  %v908_v63 = vshll.u32 %v662_v58, 16  ;;  %v2705_v52 = vld [vmem:[#allocation7 + $0x158] sm:$0xff]   ;;  %v2709_v58 = vld [vmem:[#allocation7 + $0x150] sm:$0xff]  }
 0x170   : > { %v877_v1 = vor.u32 %v876_v57, %v873_v56  ;;  %v915_v2 = vrot.slane %v913_v59, 5  ;;  %v916_v3 = vshll.u32 %v661_v50, 16  ;;  %v898_v8 = vrot.slane %v896_v43, 5  ;;  %v2702_v50 = vld [vmem:[#allocation7 + $0x120] sm:$0xff]   ;;  %v2706_v56 = vld [vmem:[#allocation7 + $0x118] sm:$0xff]  }
 0x171   : > { %v885_v5 = vor.u32 %v884_v61, %v881_v60  ;;  %v907_v6 = vrot.slane %v905_v62, 5  ;;  %v910_v7 = vrot.slane %v908_v63, 6  ;;  %v894_v11 = vor.u32 %v893_v4, %v890_v55  ;;  %v2707_v57 = vld [vmem:[#allocation7 + $0x1d8] sm:$0xff]   ;;  %v2710_v63 = vld [vmem:[#allocation7 + $0x110] sm:$0xff]  }
 0x172   : > { %v918_v9 = vrot.slane %v916_v3, 6  ;;  %v901_v12 = vrot.slane %v899_v47, 6  ;;  %v667_v14 = vrot.slane %v3284_v31, 2  ;;  %v668_v17 = vrot.slane %v3281_v30, 3  ;;  %v2701_v47 = vld [vmem:[#allocation7 + $0x160] sm:$0xff]   ;;  %v2708_v62 = vld [vmem:[#allocation7 + $0x198] sm:$0xff]  }
 0x173   : > { %v886_v15 = vsel %vm862_vm7, %v877_v1, %v885_v5  ;;  %v911_v16 = vor.u32 %v910_v7, %v907_v6  ;;  %v671_v18 = vrot.slane %v3284_v31, 3  ;;  %v869_v20 = vsel %vm862_vm7, %v865_v40, %v868_v54  ;;  %v2704_v54 = vld [vmem:[#allocation7 + $0x1a0] sm:$0xff]   ;;  %v2711_v1 = vld [vmem:[#allocation7 + $0x1d0] sm:$0xff]  }
 0x174   : > { %1563 = vmatprep.mubr.bf16.mxu1 %v886_v15  ;;  %v919_v21 = vor.u32 %v918_v9, %v915_v2  ;;  %v902_v22 = vor.u32 %v901_v12, %v898_v8  ;;  %v672_v23 = vrot.slane %v3281_v30, 4  ;;  %v669_v24 = vor.u32 %v668_v17, %v667_v14  ;;  %v2713_v2 = vld [vmem:[#allocation7 + $0x148] sm:$0xff]   ;;  %v2712_v7 = vld [vmem:[#allocation7 + $0x190] sm:$0xff]   ;;  %v2717_v9 = vld [vmem:[#allocation7 + $0x140] sm:$0xff]  }
 0x175   : > { %1564 = vmatmul.mubr.bf16.vlgmr.msra.gmra.mxu1 %v869_v20  ;;  %v665_v53 = vrot.slane %v3278_v27, 2  ;;  %v664_v55 = vrot.slane %v3274_v13, 2  ;;  %v675_v60 = vrot.slane %v3284_v31, 4  ;;  %v676_v61 = vrot.slane %v3281_v30, 5  ;;  %v2714_v31 = vld [vmem:[#allocation7 + $0x108] sm:$0xff]  }
 0x176   : > { %v920_v26 = vsel %vm862_vm7, %v911_v16, %v919_v21  ;;  %2337 = vmatpush3.bf16.msra.mxu1 %v2690_v10  ;;  %v673_v28 = vor.u32 %v672_v23, %v671_v18  ;;  %v903_v33 = vsel %vm862_vm7, %v894_v11, %v902_v22  ;;  %v939_v34 = vshrl.u32 %v669_v24, 16  ;;  %v2715_v8 = vld [vmem:[#allocation7 + $0x1c8] sm:$0xff]   ;;  %v2718_v18 = vld [vmem:[#allocation7 + $0x100] sm:$0xff]   ;;  %v2721_v22 = vld [vmem:[#allocation7 + $0x278] sm:$0xff]  }
 0x177   : > { %1603 = vmatprep.mubr.bf16.mxu0 %v920_v26  ;;  %v942_v35 = vshll.u32 %v669_v24, 16  ;;  %2338 = vmatprep.subr.bf16.mxu1 %v2693_v19  ;;  %v666_v59 = vsel %vm663_vm8, %v664_v55, %v665_v53  ;;  %v930_v4 = vshrl.u32 %v665_v53, 16  ;;  %v933_v5 = vshll.u32 %v665_v53, 16  ;;  %v2716_v17 = vld [vmem:[#allocation7 + $0x188] sm:$0xff]   ;;  %v2719_v19 = vld [vmem:[#allocation7 + $0x1c0] sm:$0xff]  }
 0x178   : > { %1604 = vmatmul.mubr.bf16.vlgmr.msra.gmra.mxu0 %v903_v33  ;;  %v957_v37 = vshrl.u32 %v673_v28, 16  ;;  %v960_v38 = vshll.u32 %v673_v28, 16  ;;  %v941_v39 = vrot.slane %v939_v34, 5  ;;  %v922_v13 = vshrl.u32 %v666_v59, 16  ;;  %v2720_v28 = vld [vmem:[#allocation7 + $0x180] sm:$0xff]   ;;  %v2722_v33 = vld [vmem:[#allocation7 + $0x238] sm:$0xff]  }
 0x179   : > { %v944_v40 = vrot.slane %v942_v35, 6  ;;  %2359 = vmatpush3.bf16.msra.mxu0 %v2692_v25  ;;  %v925_v3 = vshll.u32 %v666_v59, 16  ;;  %v677_v6 = vor.u32 %v676_v61, %v675_v60  ;;  %v670_v30 = vrot.slane %v3278_v27, 3  ;;  %v2724_v34 = vld [vmem:[#allocation7 + $0x270] sm:$0xff]   ;;  %v2740_v55 = vld [vmem:[#allocation7 + $0x208] sm:$0xff]   ;;  %v572_v60 = vpop.f32.mrf.mxu0 }
 0x17a   : > { %v959_v42 = vrot.slane %v957_v37, 5  ;;  %v962_v43 = vrot.slane %v960_v38, 6  ;;  %2339 = vmatpush3.bf16.msra.mxu1 %v2694_v29  ;;  %2360 = vmatprep.subr.bf16.mxu0 %v2695_v32  ;;  %v924_v10 = vrot.slane %v922_v13, 5  ;;  %v932_v12 = vrot.slane %v930_v4, 5  ;;  %v2723_v37 = vld [vmem:[#allocation7 + $0x2b8] sm:$0xff]   ;;  %v2741_v61 = vld [vmem:[#allocation7 + $0x288] sm:$0xff]  }
 0x17b   : > { %v945_v45 = vor.u32 %v944_v40, %v941_v39  ;;  %2340 = vmatprep.subr.bf16.mxu1 %v2697_v36  ;;  %v927_v11 = vrot.slane %v925_v3, 6  ;;  %v935_v14 = vrot.slane %v933_v5, 6  ;;  %v975_v15 = vshrl.u32 %v677_v6, 16  ;;  %v2725_v39 = vld [vmem:[#allocation7 + $0x230] sm:$0xff]   ;;  %v2727_v40 = vld [vmem:[#allocation7 + $0x268] sm:$0xff]  }
 0x17c   : > { %v963_v48 = vor.u32 %v962_v43, %v959_v42  ;;  %v978_v16 = vshll.u32 %v677_v6, 16  ;;  %v948_v20 = vshrl.u32 %v670_v30, 16  ;;  %v951_v21 = vshll.u32 %v670_v30, 16  ;;  %v2728_v42 = vld [vmem:[#allocation7 + $0x228] sm:$0xff]   ;;  %v2730_v43 = vld [vmem:[#allocation7 + $0x260] sm:$0xff]   ;;  %v2745_v30 = vld [vmem:[#allocation10 + $0x38] sm:$0xff]  }
 0x17d   : > { %1643 = vmatprep.mubr.bf16.mxu1 %v945_v45  ;;  %2361 = vmatpush3.bf16.msra.mxu0 %v2696_v41  ;;  %v928_v23 = vor.u32 %v927_v11, %v924_v10  ;;  %v936_v24 = vor.u32 %v935_v14, %v932_v12  ;;  %v977_v25 = vrot.slane %v975_v15, 5  ;;  %v2726_v41 = vld [vmem:[#allocation7 + $0x2b0] sm:$0xff]   ;;  %v2731_v45 = vld [vmem:[#allocation7 + $0x220] sm:$0xff]   ;;  %v674_v53 = vrot.slane %v3278_v27, 4  ;;  %v2748_v12 = vld [vmem:[#allocation10 + $0x28] sm:$0xff]  }
 0x17e   : > { %1683 = vmatprep.mubr.bf16.mxu0 %v963_v48  ;;  %2341 = vmatpush3.bf16.msra.mxu1 %v2698_v44  ;;  %v980_v26 = vrot.slane %v978_v16, 6  ;;  %v950_v29 = vrot.slane %v948_v20, 5  ;;  %v953_v32 = vrot.slane %v951_v21, 6  ;;  %v2729_v44 = vld [vmem:[#allocation7 + $0x2a8] sm:$0xff]   ;;  %v2734_v48 = vld [vmem:[#allocation7 + $0x218] sm:$0xff]   ;;  %v2746_v10 = vld [vmem:[#allocation10 + $0x30] sm:$0xff]  }
 0x17f   : > { %2362 = vmatprep.subr.bf16.mxu0 %v2699_v46  ;;  %2342 = vmatprep.subr.bf16.mxu1 %v2701_v47  ;;  %v937_v35 = vsel %vm862_vm7, %v928_v23, %v936_v24  ;;  %v2733_v46 = vld [vmem:[#allocation7 + $0x258] sm:$0xff]   ;;  %v2732_v47 = vld [vmem:[#allocation7 + $0x2a0] sm:$0xff]   ;;  %v969_v59 = vshll.u32 %v674_v53, 16  ;;  %v2749_v11 = vld [vmem:[#allocation8 + $0x30] sm:$0xff]  }
 0x180   : > { %v981_v36 = vor.u32 %v980_v26, %v977_v25  ;;  %v954_v38 = vor.u32 %v953_v32, %v950_v29  ;;  %v2751_v14 = vld [vmem:[#allocation8 + $0x28] sm:$0xff]   ;;  %v2750_v15 = vld [vmem:[#allocation10 + $0x20] sm:$0xff]   ;;  %v2757_v21 = vld [vmem:[#allocation8 + $0x10] sm:$0xff]  }
 0x181   : > { %2363 = vmatpush3.bf16.msra.mxu0 %v2700_v49  ;;  %v2736_v49 = vld [vmem:[#allocation7 + $0x250] sm:$0xff]   ;;  %v971_v3 = vrot.slane %v969_v59, 6  ;;  %v2753_v16 = vld [vmem:[#allocation8 + $0x20] sm:$0xff]   ;;  %v2756_v20 = vld [vmem:[#allocation10 + $0x8] sm:$0xff]  }
 0x182   : > { %2343 = vmatpush3.bf16.msra.mxu1 %v2702_v50  ;;  %2364 = vmatprep.subr.bf16.mxu0 %v2703_v51  ;;  %v2735_v50 = vld [vmem:[#allocation7 + $0x298] sm:$0xff]   ;;  %v2737_v51 = vld [vmem:[#allocation7 + $0x210] sm:$0xff]   ;;  %v2759_v23 = vld [vmem:[#allocation8 + $0x8] sm:$0xff]  }
 0x183   : > { %2344 = vmatprep.subr.bf16.mxu1 %v2705_v52  ;;  %v2739_v52 = vld [vmem:[#allocation7 + $0x248] sm:$0xff]   ;;  %v2761_v24 = vld [vmem:[%s3238_s9 + $0x8] sm:$0xf] }
 0x184   : > { %v2760_v25 = vld [vmem:[#allocation8] sm:$0xff]  }
 0x185   : > { %2365 = vmatpush3.bf16.msra.mxu0 %v2704_v54  ;;  %v2738_v54 = vld [vmem:[#allocation7 + $0x290] sm:$0xff]  }
 0x186   : > { %2345 = vmatpush3.bf16.msra.mxu1 %v2706_v56  ;;  %2366 = vmatprep.subr.bf16.mxu0 %v2707_v57  ;;  %v678_v56 = vrot.slane %v3278_v27, 5  ;;  %v2742_v57 = vld [vmem:[#allocation7 + $0x240] sm:$0xff]  }
 0x187   : > { %2346 = vmatprep.subr.bf16.mxu1 %v2709_v58  ;;  %v966_v58 = vshrl.u32 %v674_v53, 16  ;;  %v2744_v27 = vld [vmem:[#allocation7 + $0x280] sm:$0xff]  }
 0x189   : > { %2367 = vmatpush3.bf16.msra.mxu0 %v2708_v62  ;;  %v2455_v62 = vpop.f32.mrf.mxu0  ;;  %v968_v13 = vrot.slane %v966_v58, 5 }
 0x18a   : > { %2347 = vmatpush3.bf16.msra.mxu1 %v2710_v63  ;;  %2368 = vmatprep.subr.bf16.mxu0 %v2711_v1  ;;  %v2743_v63 = vld [vmem:[#allocation7 + $0x200] sm:$0xff]   ;;  %v984_v1 = vshrl.u32 %v678_v56, 16 }
 0x18b   : > { %2348 = vmatprep.subr.bf16.mxu1 %v2713_v2  ;;  %v987_v2 = vshll.u32 %v678_v56, 16  ;;  %v574_v4 = vpop.f32.mrf.mxu0 }
 0x18c   : > { %v986_v6 = vrot.slane %v984_v1, 5 }
 0x18d   : > { %2369 = vmatpush3.bf16.msra.mxu0 %v2712_v7  ;;  %v2456_v5 = vpop.f32.mrf.mxu0  ;;  %v989_v7 = vrot.slane %v987_v2, 6 }
 0x18e   : > { %2349 = vmatpush3.bf16.msra.mxu1 %v2714_v31  ;;  %2370 = vmatprep.subr.bf16.mxu0 %v2715_v8  ;;  %v972_v31 = vor.u32 %v971_v3, %v968_v13  ;;  %v2268_v5 = vld [vmem:[%s3407_s8] ss:$0 sm:$0xff] }
 0x18f   : > { %2350 = vmatprep.subr.bf16.mxu1 %v2717_v9  ;;  %v990_v8 = vor.u32 %v989_v7, %v986_v6  ;;  %v2747_v9 = vld [vmem:[#allocation8 + $0x38] sm:$0xff]  }
 0x190   : > { %v2259_v6 = vld [vmem:[%s3447_s3] ss:$0 sm:$0xff] }
 0x191   : > { %2371 = vmatpush3.bf16.msra.mxu0 %v2716_v17  ;;  %v2752_v17 = vld [vmem:[#allocation10 + $0x18] sm:$0xff]  }
 0x192   : > { %2351 = vmatpush3.bf16.msra.mxu1 %v2718_v18  ;;  %2372 = vmatprep.subr.bf16.mxu0 %v2719_v19  ;;  %v2755_v18 = vld [vmem:[#allocation8 + $0x18] sm:$0xff]   ;;  %v2754_v19 = vld [vmem:[#allocation10 + $0x10] sm:$0xff]  }
 0x193   : > { %2380 = vmatprep.subr.bf16.mxu1 %v2721_v22  ;;  %v2758_v22 = vld [vmem:[#allocation10] sm:$0xff]  }
 0x195   : > { %2373 = vmatpush3.bf16.msra.mxu0 %v2720_v28  ;;  %1644 = vmatmul.mubr.bf16.vlgmr.msra.gmra.mxu1 %v937_v35 }
 0x196   : > { %2381 = vmatpush3.bf16.msra.mxu1 %v2722_v33  ;;  %1723 = vmatprep.mubr.bf16.mxu1 %v981_v36 }
 0x197   : > { %2457 = vmatprep.subr.bf16.mxu0 %v3007_v0  ;;  %2382 = vmatprep.subr.bf16.mxu1 %v2724_v34 }
 0x198   : > { %1684 = vmatmul.mubr.bf16.vlgmr.msra.gmra.mxu0 %v954_v38 }
 0x199   : > { %2458 = vmatpush3.bf16.msra.mxu0 %v2723_v37  ;;  %2473 = vmatprep.mubr.msk.bf16.mxu0 %vm3008_vm0, %v3007_v0 }
 0x19a   : > { %2383 = vmatpush3.bf16.msra.mxu1 %v2725_v39  ;;  %2459 = vmatprep.subr.bf16.mxu0 %v3007_v0 }
 0x19b   : > { %2384 = vmatprep.subr.bf16.mxu1 %v2727_v40 }
 0x19d   : > { %2460 = vmatpush3.bf16.msra.mxu0 %v2726_v41 }
 0x19e   : > { %2385 = vmatpush3.bf16.msra.mxu1 %v2728_v42  ;;  %2461 = vmatprep.subr.bf16.mxu0 %v3007_v0 }
 0x19f   : > { %2386 = vmatprep.subr.bf16.mxu1 %v2730_v43 }
 0x1a1   : > { %2462 = vmatpush3.bf16.msra.mxu0 %v2729_v44 }
 0x1a2   : > { %2387 = vmatpush3.bf16.msra.mxu1 %v2731_v45  ;;  %2463 = vmatprep.subr.bf16.mxu0 %v3007_v0 }
 0x1a3   : > { %2388 = vmatprep.subr.bf16.mxu1 %v2733_v46 }
 0x1a5   : > { %2464 = vmatpush3.bf16.msra.mxu0 %v2732_v47 }
 0x1a6   : > { %2389 = vmatpush3.bf16.msra.mxu1 %v2734_v48  ;;  %2465 = vmatprep.subr.bf16.mxu0 %v3007_v0 }
 0x1a7   : > { %2390 = vmatprep.subr.bf16.mxu1 %v2736_v49 }
 0x1a9   : > { %2466 = vmatpush3.bf16.msra.mxu0 %v2735_v50 }
 0x1aa   : > { %2391 = vmatpush3.bf16.msra.mxu1 %v2737_v51  ;;  %2467 = vmatprep.subr.bf16.mxu0 %v3007_v0 }
 0x1ab   : > { %2392 = vmatprep.subr.bf16.mxu1 %v2739_v52 }
 0x1ad   : > { %2468 = vmatpush3.bf16.msra.mxu0 %v2738_v54 }
 0x1ae   : > { %2393 = vmatpush3.bf16.msra.mxu1 %v2740_v55  ;;  %2469 = vmatprep.subr.bf16.mxu0 %v3007_v0 }
 0x1af   : > { %2394 = vmatprep.subr.bf16.mxu1 %v2742_v57 }
 0x1b1   : > { %2470 = vmatpush3.bf16.msra.mxu0 %v2741_v61 }
 0x1b2   : > { %2395 = vmatpush3.bf16.msra.mxu1 %v2743_v63  ;;  %2471 = vmatprep.subr.bf16.mxu0 %v3007_v0 }
 0x1b3   : > { %2477 = vmatprep.subr.bf16.mxu1 %v3007_v0 }
 0x1b5   : > { %2472 = vmatpush3.bf16.msra.mxu0 %v2744_v27  ;;  %1724 = vmatmul.mubr.bf16.vlgmr.msra.gmra.mxu1 %v972_v31 }
 0x1b6   : > { %2497 = vmatprep.subr.bf16.mxu0 %v3007_v0  ;;  %2493 = vmatprep.mubr.msk.bf16.mxu1 %vm3008_vm0, %v3007_v0 }
 0x1b7   : > { %2478 = vmatpush3.bf16.msra.mxu1 %v2747_v9 }
 0x1b8   : > { %2474 = vmatmul.mubr.bf16.vlgmr.msra.gmra.mxu0 %v990_v8  ;;  %2479 = vmatprep.subr.bf16.mxu1 %v3007_v0 }
 0x1b9   : > { %2513 = vmatprep.mubr.msk.bf16.mxu0 %vm3008_vm0, %v3007_v0  ;;  %2498 = vmatpush3.bf16.msra.mxu0 %v2745_v30 }
 0x1ba   : > { %2499 = vmatprep.subr.bf16.mxu0 %v3007_v0 }
 0x1bb   : > { %2480 = vmatpush3.bf16.msra.mxu1 %v2749_v11 }
 0x1bc   : > { %2481 = vmatprep.subr.bf16.mxu1 %v3007_v0 }
 0x1bd   : > { %2500 = vmatpush3.bf16.msra.mxu0 %v2746_v10 }
 0x1be   : > { %2501 = vmatprep.subr.bf16.mxu0 %v3007_v0 }
 0x1bf   : > { %2482 = vmatpush3.bf16.msra.mxu1 %v2751_v14 }
 0x1c0   : > { %2483 = vmatprep.subr.bf16.mxu1 %v3007_v0 }
 0x1c1   : > { %2502 = vmatpush3.bf16.msra.mxu0 %v2748_v12 }
 0x1c2   : > { %2503 = vmatprep.subr.bf16.mxu0 %v3007_v0 }
 0x1c3   : > { %2484 = vmatpush3.bf16.msra.mxu1 %v2753_v16 }
 0x1c4   : > { %2485 = vmatprep.subr.bf16.mxu1 %v3007_v0 }
 0x1c5   : > { %2504 = vmatpush3.bf16.msra.mxu0 %v2750_v15 }
 0x1c6   : > { %2505 = vmatprep.subr.bf16.mxu0 %v3007_v0 }
 0x1c7   : > { %2486 = vmatpush3.bf16.msra.mxu1 %v2755_v18 }
 0x1c8   : > { %2487 = vmatprep.subr.bf16.mxu1 %v3007_v0 }
 0x1c9   : > { %2506 = vmatpush3.bf16.msra.mxu0 %v2752_v17 }
 0x1ca   : > { %2507 = vmatprep.subr.bf16.mxu0 %v3007_v0 }
 0x1cb   : > { %2488 = vmatpush3.bf16.msra.mxu1 %v2757_v21 }
 0x1cc   : > { %2489 = vmatprep.subr.bf16.mxu1 %v3007_v0 }
 0x1cd   : > { %2508 = vmatpush3.bf16.msra.mxu0 %v2754_v19 }
 0x1ce   : > { %2509 = vmatprep.subr.bf16.mxu0 %v3007_v0 }
 0x1cf   : > { %2490 = vmatpush3.bf16.msra.mxu1 %v2759_v23 }
 0x1d0   : > { %2491 = vmatprep.subr.bf16.mxu1 %v3007_v0 }
 0x1d1   : > { %2510 = vmatpush3.bf16.msra.mxu0 %v2756_v20 }
 0x1d2   : > { %2511 = vmatprep.subr.bf16.mxu0 %v3007_v0  ;;  %v2170_v0 = vld [vmem:[%s3403_s4] ss:$0 sm:$0xff] }
 0x1d3   : > { %2492 = vmatpush3.bf16.msra.mxu1 %v2760_v25 }
 0x1d5   : > { %2512 = vmatpush3.bf16.msra.mxu0 %v2758_v22 }
 0x1d8   : > { %2514 = vmatmul.mubr.bf16.vlgmr.msra.gmra.mxu0 %v2761_v24 }
 0x235   : > { %v2308_v26 = vpop.f32.mrf.mxu1 }
 0x237   : > { %v2309_v28 = vpop.f32.mrf.mxu1 }
 0x238   : > { %v2330_v29 = vpop.f32.mrf.mxu0  ;;  %v2310_v45 = vadd.f32 %v2309_v28, %v2308_v26 }
 0x239   : > { %v2311_v32 = vpop.f32.mrf.mxu1 }
 0x23a   : > { %v2331_v33 = vpop.f32.mrf.mxu0  ;;  %v1566_v46 = vadd.f32 %v2310_v45, %v2170_v0 }
 0x23b   : > { %v2312_v34 = vpop.f32.mrf.mxu1  ;;  %v2332_v47 = vadd.f32 %v2331_v33, %v2330_v29 }
 0x23c   : > { %v2333_v35 = vpop.f32.mrf.mxu0 }
 0x23d   : > { %v1606_v49 = vadd.f32 %v2332_v47, %v1566_v46 }
 0x23e   : > { %v2334_v36 = vpop.f32.mrf.mxu0 }
 0x255   : > { %v2352_v37 = vpop.f32.mrf.mxu1 }
 0x257   : > { %v2353_v38 = vpop.f32.mrf.mxu1 }
 0x258   : > { %v2374_v39 = vpop.f32.mrf.mxu0  ;;  %v2354_v48 = vadd.f32 %v2353_v38, %v2352_v37 }
 0x259   : > { %v2355_v40 = vpop.f32.mrf.mxu1 }
 0x25a   : > { %v2375_v41 = vpop.f32.mrf.mxu0  ;;  %v1646_v50 = vadd.f32 %v2354_v48, %v1606_v49 }
 0x25b   : > { %v2356_v42 = vpop.f32.mrf.mxu1  ;;  %v2376_v51 = vadd.f32 %v2375_v41, %v2374_v39 }
 0x25c   : > { %v2377_v43 = vpop.f32.mrf.mxu0 }
 0x25d   : > { %v1686_v54 = vadd.f32 %v2376_v51, %v1646_v50 }
 0x25e   : > { %v2378_v44 = vpop.f32.mrf.mxu0 }
 0x275   : > { %v2396_v52 = vpop.f32.mrf.mxu1 }
 0x277   : > { %v2397_v53 = vpop.f32.mrf.mxu1 }
 0x278   : > { %v1765_v55 = vpop.f32.mrf.mxu0  ;;  %v2398_v56 = vadd.f32 %v2397_v53, %v2396_v52 }
 0x279   : > { %v2399_v57 = vpop.f32.mrf.mxu1 }
 0x27a   : > { %v1726_v58 = vadd.f32 %v2398_v56, %v1686_v54  ;;  %v2475_v59 = vpop.f32.mrf.mxu0 }
 0x27b   : > { %v2400_v60 = vpop.f32.mrf.mxu1 }
 0x27c   : > { %v1766_v61 = vadd.f32 %v1765_v55, %v1726_v58  ;;  %v1768_v62 = vpop.f32.mrf.mxu0 }
 0x27e   : > { %v1771_v63 = vmax.f32 %v1766_v61, 0.0  ;;  %v2476_v1 = vpop.f32.mrf.mxu0 }
 0x280   : > { %v1772_v2 = vpack.c.bf16 %v1771_v63, %v1771_v63 }
 0x282   : > { %2494 = vmatmul.mubr.bf16.vlgmr.msra.gmra.mxu1 %v1772_v2 }
 0x298   : > { %v1989_v13 = vpop.f32.mrf.mxu0 }
 0x299   : > { %v1990_v7 = vadd.f32 %v2268_v5, %v1989_v13 }
 0x29a   : > { %v2515_v3 = vpop.f32.mrf.mxu0 }
 0x29c   : > { %v1992_v4 = vpop.f32.mrf.mxu0 }
 0x29e   : > { %v2516_v27 = vpop.f32.mrf.mxu0 }
 0x342   : > { %v1878_v31 = vpop.f32.mrf.mxu1 }
 0x343   : > { %v1879_v8 = vadd.f32 %v2259_v6, %v1878_v31 }
 0x344   : > { %v2495_v30 = vpop.f32.mrf.mxu1 }
 0x345   : > { %v1995_v9 = vadd.f32 %v1990_v7, %v1879_v8 }
 0x346   : > { %v1881_v10 = vpop.f32.mrf.mxu1 }
 0x347   : > { %v1996_v11 = vmax.f32 %v1995_v9, 0.0 }
 0x348   : > { %v2496_v12 = vpop.f32.mrf.mxu1 }
 0x349   : > { %v1997_v14 = vpack.c.bf16 %v1996_v11, %v1996_v11 }
 0x34b   : > { %1998 = vst [vmem:[%s426_s24] sm:$0xf] %v1997_v14 }
 0x34c   : > { %2907 = shalt.err (!%p2904_p5)
}
 0x34d   : > { %s2908_s29 = scalar_lea.hbm %s2013_s19, 64  ;;  %s2912_s20 = scalar_lea.hbm %s3449_s5, 384 }
 0x34e   : > { %p2909_p11 = scmp.ne.s32.totalorder %s2013_s19, %s2908_s29  ;;  %p2913_p9 = scmp.lt.s32.totalorder %s2013_s19, %s3449_s5 }
 0x34f   : > { %p2914_p10 = scmp.lt.s32.totalorder %s2912_s20, %s2908_s29 }
 0x350   : > { %p2910_p7 = pnand %p2909_p11, %p3200_p12 }
 0x351   : > { %p2915_p13 = por %p2914_p10, %p2913_p9 }
 0x352   : > { %p2911_p6 = pneg %p2910_p7 }
 0x354   : > { %p2916_p1 = pnand %p2915_p13, %p2911_p6 }
 0x356   : > { %2919 = shalt.err (!%p2916_p1)
}
 0x357   : > { %2540 = dma.vmem_to_hbm [thread:$0]  (%p3200_p12), %s2016_s22, 64, %s2013_s19, %s2000_s21  }
 0x358 PF: > { %s3450_s3 = sld [smem:[#allocation17_spill]] }
 0x359   : > { %s3451_s25 = sld [smem:[#allocation16_spill]] }
 0x35a   : > { %s3452_s17 = sld [smem:[#allocation18_spill]] }
 0x35e   : > { %p2572_p4 = scmp.ge.s32.totalorder %s3450_s3, 2 }
 0x35f   : > { %s2027_s6 = sand.u32 1, %s3451_s25  }
 0x360   : > { %p3453_p8 = scmp.ne.s32.totalorder %s3452_s17, 0  ;;  %s2028_s24 = scalar_lea.sflag [#allocation4], %s2027_s6 }
 0x362   : > { %p2560_p0 = pnand %p2572_p4, %p3453_p8 }
 0x364   : > { %p2561_p3 = pneg %p2560_p0 }
 0x366   : > { %2965 = dma.done.wait (%p2561_p3), %s2028_s24, 64  }
 0x367   : > { %2967 = vsyncadd (%p2561_p3), %s2028_s24, 4294967232  ;;  %s27_s16 = sadd.s32 1, %s3450_s3   ;;  %s3454_s1 = sld [smem:[#allocation19_spill]] }
 0x368   : > { %p24_p2 = scmp.ge.s32.totalorder %s27_s16, 8   ;;  %s3455_s22 = sld [smem:[#allocation21_spill]] }
 0x369   : > { %s3456_s30 = smov %s2974_s10  ;;  %s3457_s10 = smov %s2978_s11 }
 0x36a   : > { %s3458_s11 = smov %s3219_s7  ;;  %s3459_s12 = smov %s2990_s14 }
 0x36b   : > { %s3460_s13 = smov %s2994_s15  ;;  %26 = sbr.rel (!%p24_p2) target bundleno = 16 (0x10), region = 117 }
 0x36d   : > { %s3461_s14 = smov %s3454_s1 }
 0x36e   : > { %s3462_s15 = smov %s3455_s22 }
 0x370   :  { %2033 = vsyncpa [#allocation3], 1 }
 0x371   :  { %2035 = vsyncpa [#allocation3 + $0x1], 1 }
 0x372   :  { %2036 = vsyncpa [#allocation6], 1 }
 0x373   :  { %2037 = vsyncpa [#allocation9], 1 }
 0x374   :  { %2038 = vsyncpa [#allocation4], 1 }
 0x375   :  { %2040 = vsyncpa [#allocation4 + $0x1], 1 }

// kernel: tpu_custom_call.1
= control target key start
LH: loop header
LB: loop body
LE: loop exit
PB: predicated region body
PF: predicated region fallthrough
CT: control target
= control target key end

     0   :  { %s3399_s0 = inlined_call_operand.hbm [shape: bf16[2,3,40,128], index: 0, kind: input, shape index: {}]   ;;  %s3400_s1 = inlined_call_operand.hbm [shape: bf16[128,128], index: 1, kind: input, shape index: {}]   ;;  %s3401_s2 = inlined_call_operand.vmem [shape: f32[1,128], index: 2, kind: input, shape index: {}]   ;;  %s3402_s3 = inlined_call_operand.hbm [shape: bf16[1408,128], index: 3, kind: input, shape index: {}]   ;;  %s3403_s4 = inlined_call_operand.vmem [shape: f32[1,128], index: 4, kind: input, shape index: {}]   ;;  %s3404_s5 = inlined_call_operand.hbm [shape: bf16[128,128], index: 5, kind: input, shape index: {}]   ;;  %s3405_s6 = inlined_call_operand.vmem [shape: f32[1,128], index: 6, kind: input, shape index: {}]   ;;  %s3406_s7 = inlined_call_operand.hbm [shape: bf16[128,128], index: 7, kind: input, shape index: {}]   ;;  %s3407_s8 = inlined_call_operand.vmem [shape: f32[1,128], index: 8, kind: input, shape index: {}]   ;;  %s3408_s9 = inlined_call_operand.hbm [shape: bf16[2,24,128], index: 9, kind: output, shape index: {}]  }
   0x1   :  { %3420 = sst [smem:[#allocation22_spill]] %s3400_s1 }
   0x2   :  { %3421 = sst [smem:[#allocation23_spill]] %s3402_s3 }
   0x3   :  { %3422 = sst [smem:[#allocation24_spill]] %s3404_s5 }
   0x4   :  { %3423 = sst [smem:[#allocation25_spill]] %s3405_s6 }
   0x5   :  { %3424 = sst [smem:[#allocation26_spill]] %s3406_s7 }
   0x6   :  { %3425 = sst [smem:[#allocation27_spill]] %s3408_s9 }
   0x7   :  { %14 = vsyncpa [#allocation3], 0 }
   0x8   :  { %16 = vsyncpa [#allocation3 + $0x1], 0 }
   0x9   :  { %17 = vsyncpa [#allocation6], 0 }
   0xa   :  { %18 = vsyncpa [#allocation9], 0 }
   0xb   :  { %19 = vsyncpa [#allocation4], 0 }
   0xc   :  { %21 = vsyncpa [#allocation4 + $0x1], 0  ;;  %s3061_s30 = smov 0   ;;  %s3063_s10 = smov 0  }
   0xd   :  { %s3065_s11 = smov 0   ;;  %s3067_s12 = smov 0  }
   0xe   :  { %s3069_s13 = smov 0   ;;  %s3071_s14 = smov 0  }
   0xf   :  { %s3073_s15 = smov 0   ;;  %s3075_s16 = smov 0  }
  0x10 LB: > { %3426 = sst [smem:[#allocation16_spill]] %s2970_s30  ;;  %s2139_s17 = sadd.s32 4294967295, %s2998_s16   ;;  %s2998_s16 = sphi %s3075_s16, %s27_s16   ;;  %s2994_s15 = sphi %s3073_s15, %s3462_s15   ;;  %s2990_s14 = sphi %s3071_s14, %s3461_s14   ;;  %s2986_s13 = sphi %s3069_s13, %s3460_s13   ;;  %s2982_s12 = sphi %s3067_s12, %s3459_s12   ;;  %s2978_s11 = sphi %s3065_s11, %s3458_s11   ;;  %s2974_s10 = sphi %s3063_s10, %s3457_s10   ;;  %s2970_s30 = sphi %s3061_s30, %s3456_s30  }
  0x11   : > { %3427 = sst [smem:[#allocation17_spill]] %s2998_s16  ;;  %s2140_s18 = sadd.s32 4294967294, %s2998_s16  }
  0x12   : > { %p61_p0 = scmp.ne.s32.totalorder %s2974_s10, %s2970_s30  ;;  %p3105_p1 = scmp.eq.s32.totalorder %s2139_s17, 0 }
  0x13   : > { %p3109_p2 = scmp.eq.s32.totalorder %s2139_s17, 5  ;;  %p261_p3 = scmp.eq.s32.totalorder %s2140_s18, 5 }
  0x14   : > { %p3115_p4 = por %p3105_p1, %p61_p0  ;;  %p2141_p5 = scmp.ge.s32.totalorder %s2998_s16, 1 }
  0x15   : > { %p3120_p6 = por %p261_p3, %p61_p0  ;;  %p268_p7 = scmp.lt.s32.totalorder %s2998_s16, 7 }
  0x16   : > { %s3000_s24 = smov [#allocation5]   ;;  %s3001_s27 = smov [#allocation8]  }
  0x17   : > { %s3431_s22 = scalar_select %p3120_p6, 1, 0 }
  0x18   : > { %p3125_p8 = pnand %p2141_p5, %p268_p7  ;;  %s280_s25 = sshll.u32 %s3000_s24, 4  ;;  %s281_s25 = int_to_ptr.vmem [resolvable:$true] %s280_s25 }
  0x19   : > { %3432 = sst [smem:[#allocation18_spill]] %s3431_s22  ;;  %s312_s28 = sshll.u32 %s3001_s27, 4  ;;  %s313_s28 = int_to_ptr.vmem [resolvable:$true] %s312_s28 }
  0x1a   : > { %p2542_p9 = pneg %p3125_p8  ;;  %s3002_s29 = smov [#allocation7]  }
  0x1b   : > { %s296_s17 = sshll.u32 %s3002_s29, 4  ;;  %s2773_s18 = scalar_lea.vmem %s281_s25, 1024  ;;  %s297_s17 = int_to_ptr.vmem [resolvable:$true] %s296_s17 }
  0x1c   : > { %p3133_p10 = pnand %p2542_p9, %p3105_p1  ;;  %p2774_p12 = scmp.ne.s32.totalorder %s281_s25, %s2773_s18 }
  0x1d   : > { %p2781_p3 = scmp.lt.s32.totalorder %s281_s25, %s281_s25  ;;  %p2782_p5 = scmp.lt.s32.totalorder %s2773_s18, %s2773_s18 }
  0x1e   : > { %p2764_p11 = pneg %p3133_p10 }
  0x1f   : > { %p2783_p7 = por %p2782_p5, %p2781_p3 }
  0x20   : > { %p2776_p13 = pnand %p2774_p12, %p2764_p11 }
  0x22   : > { %p2777_p0 = pneg %p2776_p13 }
  0x24   : > { %p2784_p9 = pnand %p2783_p7, %p2777_p0 }
  0x26   : > { %2787 = shalt.err (!%p2784_p9)
}
  0x27   : > { %s3412_s24 = smov 64   ;;  %s3413_s27 = smov 4  }
  0x28   : > { %s3435_s1 = sld [smem:[#allocation22_spill]]  ;;  %s2799_s30 = scalar_lea.vmem %s313_s28, 1024 }
  0x29   : > { %p2800_p12 = scmp.ne.s32.totalorder %s313_s28, %s2799_s30  ;;  %p2807_p0 = scmp.lt.s32.totalorder %s313_s28, %s313_s28 }
  0x2a   : > { %p2808_p5 = scmp.lt.s32.totalorder %s2799_s30, %s2799_s30 }
  0x2b   : > { %p2802_p13 = pnand %p2800_p12, %p2764_p11 }
  0x2c   : > { %p2809_p7 = por %p2808_p5, %p2807_p0 }
  0x2d   : > { %p2803_p3 = pneg %p2802_p13 }
  0x2e   : > { %2545 = dma.hbm_to_vmem [thread:$0]  (!%p3133_p10), %s3435_s1, 1024, %s281_s25, [#allocation6], %s3412_s24, %s3412_s24, %s3413_s27  }
  0x2f   : > { %p2810_p9 = pnand %p2809_p7, %p2803_p3 }
  0x31   : > { %2813 = shalt.err (!%p2810_p9)
}
  0x32   : > { %s3436_s5 = sld [smem:[#allocation24_spill]]  ;;  %s2825_s22 = scalar_lea.vmem %s297_s17, 11264 }
  0x33   : > { %p2826_p6 = scmp.ne.s32.totalorder %s297_s17, %s2825_s22  ;;  %p2833_p0 = scmp.lt.s32.totalorder %s297_s17, %s297_s17 }
  0x34   : > { %p2834_p3 = scmp.lt.s32.totalorder %s2825_s22, %s2825_s22 }
  0x35   : > { %p2828_p12 = pnand %p2826_p6, %p2764_p11 }
  0x36   : > { %p2835_p5 = por %p2834_p3, %p2833_p0 }
  0x37   : > { %p2829_p13 = pneg %p2828_p12 }
  0x38   : > { %2551 = dma.hbm_to_vmem [thread:$0]  (!%p3133_p10), %s3436_s5, 1024, %s313_s28, [#allocation9], %s3412_s24, %s3412_s24, %s3413_s27  }
  0x39   : > { %p2836_p7 = pnand %p2835_p5, %p2829_p13 }
  0x3b   : > { %2839 = shalt.err (!%p2836_p7)
}
  0x3c   : > { %s3437_s3 = sld [smem:[#allocation23_spill]]  ;;  %s3005_s25 = smov [#allocation10]  }
  0x3d   : > { %s328_s28 = sshll.u32 %s3005_s25, 4  ;;  %s329_s28 = int_to_ptr.vmem [resolvable:$true] %s328_s28 }
  0x3e   : > { %s2851_s29 = scalar_lea.vmem %s329_s28, 1024  ;;  %p2859_p13 = scmp.lt.s32.totalorder %s329_s28, %s329_s28 }
  0x3f   : > { %p2852_p6 = scmp.ne.s32.totalorder %s329_s28, %s2851_s29  ;;  %p2860_p0 = scmp.lt.s32.totalorder %s2851_s29, %s2851_s29 }
  0x41   : > { %p2854_p9 = pnand %p2852_p6, %p2764_p11  ;;  %p2861_p3 = por %p2860_p0, %p2859_p13 }
  0x42   : > { %2548 = dma.hbm_to_vmem [thread:$0]  (!%p3133_p10), %s3437_s3, 11264, %s297_s17, [#allocation6], %s3412_s24, %s3412_s24, %s3413_s27  }
  0x43   : > { %p2855_p12 = pneg %p2854_p9 }
  0x45   : > { %p2862_p5 = pnand %p2861_p3, %p2855_p12 }
  0x47   : > { %2865 = shalt.err (!%p2862_p5)
}
  0x48   : > { %s3438_s7 = sld [smem:[#allocation26_spill]]  ;;  %s36_s22 = sadd.s32 1, %s2990_s14 }
  0x49   : > { %s39_s26 = sadd.s32 1, %s2994_s15  ;;  %p37_p11 = scmp.ge.s32.totalorder %s36_s22, 3 }
  0x4a   : > { %s48_s9 = sadd.s32 1, %s2978_s11  ;;  %p55_p7 = scmp.ne.s32.totalorder %s2978_s11, %s2974_s10 }
  0x4b   : > { %p56_p6 = scmp.eq.s32.totalorder %s2998_s16, 0  ;;  %s3464_s22 = smov (%p37_p11, %s36_s22), 0 }
  0x4c   : > { %3439 = sst [smem:[#allocation19_spill]] %s3464_s22  ;;  %s3466_s26 = smov (!%p37_p11, %s39_s26), %s2994_s15 }
  0x4d   : > { %s44_s30 = ssub.s32 %s2990_s14, %s3464_s22  ;;  %p3194_p9 = por %p56_p6, %p55_p7 }
  0x4e   : > { %2554 = dma.hbm_to_vmem [thread:$0]  (!%p3133_p10), %s3438_s7, 1024, %s329_s28, [#allocation9], %s3412_s24, %s3412_s24, %s3413_s27  }
  0x4f   : > { %p41_p10 = scmp.ge.s32.totalorder %s3466_s26, 2  ;;  %p3200_p12 = por %p3109_p2, %p55_p7 }
  0x50   : > { %p2567_p13 = scmp.lt.s32.totalorder %s2998_s16, 6  ;;  %s345_s29 = sand.u32 1, %s2978_s11  }
  0x51   : > { %s3441_s28 = scalar_select %p3200_p12, 1, 0 }
  0x52   : > { %s3468_s26 = smov (%p41_p10, %s3466_s26), 0  ;;  %s2517_s17 = smul.u32 20, %s345_s29 }
  0x53   : > { %3442 = sst [smem:[#allocation20_spill]] %s3441_s28  ;;  %s43_s18 = ssub.s32 %s2994_s15, %s3468_s26 }
  0x54   : > { %3443 = sst [smem:[#allocation21_spill]] %s3468_s26  ;;  %s2518_s24 = smul.u32 5, %s2990_s14 }
  0x55   : > { %s45_s27 = sor.u32 %s44_s30, %s43_s18  ;;  %s2519_s1 = smul.u32 15, %s2994_s15 }
  0x56   : > { %p46_p0 = scmp.eq.s32.totalorder %s45_s27, 0  ;;  %s349_s3 = scalar_lea.vmem [#allocation2], %s2517_s17 }
  0x57   : > { %s358_s5 = sshll.u32 %s349_s3, 4  ;;  %p3214_p3 = pnand %p2567_p13, %p3194_p9  ;;  %s359_s5 = int_to_ptr.vmem [resolvable:$true] %s358_s5 }
  0x58   : > { %s3219_s7 = scalar_select %p46_p0, %s2978_s11, %s48_s9  }
  0x59   : > { %s355_s22 = sadd.s32 %s2519_s1, %s2518_s24  ;;  %s346_s30 = scalar_lea.sflag [#allocation3], %s345_s29 }
  0x5a   : > { %s2147_s16 = sshll.u32 %s355_s22, 6  ;;  %p2868_p2 = pneg %p3214_p3 }
  0x5b   : > { %s357_s26 = scalar_lea.hbm %s3399_s0, %s2147_s16  ;;  %s2879_s27 = scalar_lea.vmem %s359_s5, 320 }
  0x5c   : > { %p2880_p5 = scmp.ne.s32.totalorder %s359_s5, %s2879_s27  ;;  %s3006_s3 = smov [#allocation2]  }
  0x5d   : > { %s2884_s25 = sshll.u32 %s3006_s3, 4  ;;  %s2885_s25 = int_to_ptr.vmem [resolvable:$false] %s2884_s25 }
  0x5e   : > { %p2882_p11 = pnand %p2880_p5, %p2868_p2  ;;  %s2886_s17 = scalar_lea.vmem %s2885_s25, 640 }
  0x5f   : > { %p2887_p6 = scmp.lt.s32.totalorder %s359_s5, %s2885_s25  ;;  %p2888_p9 = scmp.lt.s32.totalorder %s2886_s17, %s2879_s27 }
  0x60   : > { %p2883_p7 = pneg %p2882_p11 }
  0x61   : > { %p2889_p10 = por %p2888_p9, %p2887_p6 }
  0x63   : > { %p2890_p13 = pnand %p2889_p10, %p2883_p7 }
  0x65   : > { %2893 = shalt.err (!%p2890_p13)
}
  0x66   : > { %s3445_s1 = smov 4   ;;  %s3446_s6 = smov 64  }
  0x67   : > { %2558 = dma.hbm_to_vmem [thread:$0]  (!%p3214_p3), %s357_s26, 320, %s359_s5, %s346_s30, %s3446_s6, %s3446_s6, %s3445_s1  }
  0x68   : > { %370 = sbr.rel (%p3125_p8) target bundleno = 856 (0x358), region = 56  ;;  %s3234_s16 = sand.u32 (!%p3125_p8), 1, %s2974_s10  }
  0x69   : > { %s2520_s24 = smul.u32 (!%p3125_p8), 20, %s3234_s16  ;;  %s373_s22 = scalar_lea.sflag (!%p3125_p8), [#allocation3], %s3234_s16 }
  0x6b   : > { %s3238_s9 = scalar_lea.vmem (!%p3125_p8), [#allocation2], %s2520_s24 }
  0x6d   : > { %2953 = dma.done.wait (%p3115_p4), %s373_s22, 320  }
  0x6e   : > { %2955 = vsyncadd (%p3115_p4), %s373_s22, 4294966976 }
  0x6f   : > { %2957 = dma.done.wait (%p3105_p1), [#allocation6], 12288  }
  0x70   : > { %2959 = vsyncadd (%p3105_p1), [#allocation6], 4294955008 }
  0x71   : > { %2961 = dma.done.wait (%p3105_p1), [#allocation9], 2048  }
  0x72   : > { %2963 = vsyncadd (%p3105_p1), [#allocation9], 4294965248  ;;  %v3007_v0 = vmov 0.0   ;;  %vm3008_vm0 = vmmov 0   ;;  %v2646_v1 = vld [vmem:[#allocation5 + $0x38] sm:$0xff]   ;;  %v2647_v2 = vld [vmem:[#allocation5 + $0x30] sm:$0xff]   ;;  %v583_v48 = vlaneseq }
  0x73   : > { %2429 = vmatprep.subr.bf16.mxu0 %v3007_v0  ;;  %2445 = vmatprep.mubr.msk.bf16.mxu0 %vm3008_vm0, %v3007_v0  ;;  %v2648_v3 = vld [vmem:[#allocation5 + $0x28] sm:$0xff]   ;;  %v2649_v4 = vld [vmem:[#allocation5 + $0x20] sm:$0xff]   ;;  %v2650_v5 = vld [vmem:[#allocation5 + $0x18] sm:$0xff]   ;;  %s2166_s5 = sshll.u32 %s2982_s12, 3  ;;  %v3009_v60 = vmov 0   ;;  %s2521_s20 = smul.u32 3, %s2986_s13 }
  0x74   : > { %2430 = vmatpush3.bf16.msra.mxu0 %v2646_v1  ;;  %v2651_v6 = vld [vmem:[#allocation5 + $0x10] sm:$0xff]   ;;  %v2652_v7 = vld [vmem:[#allocation5 + $0x8] sm:$0xff]   ;;  %v2653_v8 = vld [vmem:[#allocation5] sm:$0xff]   ;;  %v584_v49 = vshrl.u32 %v583_v48, 7  ;;  %s2167_s19 = sadd.s32 4294967280, %s2166_s5  ;;  %s3447_s3 = sld [smem:[#allocation25_spill]] }
  0x75   : > { %2431 = vmatprep.subr.bf16.mxu0 %v3007_v0  ;;  %v2654_v9 = vld [vmem:[%s3238_s9] sm:$0xff]   ;;  %v432_v10 = vld [vmem:[%s3238_s9 + $0x8] sm:$0xf]  ;;  %v433_v11 = vld [vmem:[%s3238_s9 + $0xc] sm:$0xf]  ;;  %v590_v51 = vstv %s2167_s19  ;;  %s2153_s25 = sshll.u32 %s3234_s16, 2  ;;  %s2011_s17 = sadd.s32 %s2982_s12, %s2521_s20 }
  0x76   : > { %v2156_v12 = vcombine.low %v432_v10, %v433_v11  ;;  %v2656_v13 = vld [vmem:[#allocation7 + $0x78] sm:$0xff]   ;;  %v2660_v17 = vld [vmem:[#allocation7 + $0x70] sm:$0xff]   ;;  %v2664_v21 = vld [vmem:[#allocation7 + $0x68] sm:$0xff]   ;;  %v585_v50 = vadd.s32 8, %v584_v49  ;;  %v591_v52 = vadd.s32 %v590_v51, %v584_v49  ;;  %v586_v54 = vadd.s32 16, %v584_v49  ;;  %s2278_s6 = sshll.u32 %s2011_s17, 6 }
  0x77   : > { %v2657_v14 = vld [vmem:[#allocation7 + $0x38] sm:$0xff]   ;;  %2292 = vmatprep.subr.bf16.mxu1 %v2656_v13  ;;  %v2661_v18 = vld [vmem:[#allocation7 + $0x30] sm:$0xff]   ;;  %v2665_v22 = vld [vmem:[#allocation7 + $0x28] sm:$0xff]   ;;  %v587_v55 = vadd.s32 24, %v584_v49  ;;  %s426_s24 = scalar_lea.vmem [#allocation11], %s2153_s25  ;;  %s3449_s5 = sld [smem:[#allocation27_spill]] }
  0x78   : > { %2432 = vmatpush3.bf16.msra.mxu0 %v2647_v2  ;;  %v2658_v15 = vld [vmem:[#allocation7 + $0xf8] sm:$0xff]   ;;  %2293 = vmatpush3.bf16.msra.mxu1 %v2657_v14  ;;  %v2662_v19 = vld [vmem:[#allocation7 + $0xf0] sm:$0xff]   ;;  %v2666_v23 = vld [vmem:[#allocation7 + $0xe8] sm:$0xff]   ;;  %v592_v53 = vadd.s32 %v590_v51, %v585_v50  ;;  %vm595_vm1 = vcmp.ge.s32.totalorder %v591_v52, 0  ;;  %vm599_vm2 = vcmp.lt.s32.totalorder %v591_v52, 20  ;;  %v593_v56 = vadd.s32 %v590_v51, %v586_v54  ;;  %s2015_s22 = sshll.u32 %s426_s24, 4  ;;  %s2016_s22 = int_to_ptr.vmem [resolvable:$true] %s2015_s22 }
  0x79   : > { %2433 = vmatprep.subr.bf16.mxu0 %v3007_v0  ;;  %v2659_v16 = vld [vmem:[#allocation7 + $0xb8] sm:$0xff]   ;;  %2294 = vmatprep.subr.bf16.mxu1 %v2660_v17  ;;  %v2663_v20 = vld [vmem:[#allocation7 + $0xb0] sm:$0xff]   ;;  %v2667_v24 = vld [vmem:[#allocation7 + $0xa8] sm:$0xff]   ;;  %v594_v57 = vadd.s32 %v590_v51, %v587_v55  ;;  %s2000_s21 = scalar_lea.sflag [#allocation4], %s3234_s16  ;;  %s2894_s23 = scalar_lea.vmem %s2016_s22, 64 }
  0x7a   : > { %v2668_v25 = vld [vmem:[#allocation7 + $0x60] sm:$0xff]   ;;  %v2672_v29 = vld [vmem:[#allocation7 + $0x58] sm:$0xff]   ;;  %v2676_v33 = vld [vmem:[#allocation7 + $0x50] sm:$0xff]   ;;  %vm596_vm3 = vcmp.ge.s32.totalorder %v592_v53, 0  ;;  %vm600_vm4 = vcmp.lt.s32.totalorder %v592_v53, 20  ;;  %vm597_vm9 = vcmp.ge.s32.totalorder %v593_v56, 0  ;;  %p2895_p1 = scmp.ne.s32.totalorder %s2016_s22, %s2894_s23 }
  0x7b   : > { %v2669_v26 = vld [vmem:[#allocation7 + $0x20] sm:$0xff]   ;;  %v2673_v30 = vld [vmem:[#allocation7 + $0x18] sm:$0xff]   ;;  %v2677_v34 = vld [vmem:[#allocation7 + $0x10] sm:$0xff]   ;;  %vm601_vm10 = vcmp.lt.s32.totalorder %v593_v56, 20  ;;  %vm598_vm11 = vcmp.ge.s32.totalorder %v594_v57, 0  ;;  %vm602_vm12 = vcmp.lt.s32.totalorder %v594_v57, 20 }
  0x7c   : > { %2434 = vmatpush3.bf16.msra.mxu0 %v2648_v3  ;;  %2295 = vmatpush3.bf16.msra.mxu1 %v2661_v18  ;;  %v2670_v27 = vld [vmem:[#allocation7 + $0xe0] sm:$0xff]   ;;  %v2674_v31 = vld [vmem:[#allocation7 + $0xd8] sm:$0xff]   ;;  %v2678_v35 = vld [vmem:[#allocation7 + $0xd0] sm:$0xff]   ;;  %p2896_p4 = pnand %p2895_p1, %p3200_p12  ;;  %s3010_s12 = smov [#allocation11]  }
  0x7d   : > { %2435 = vmatprep.subr.bf16.mxu0 %v3007_v0  ;;  %2296 = vmatprep.subr.bf16.mxu1 %v2664_v21  ;;  %v2671_v28 = vld [vmem:[#allocation7 + $0xa0] sm:$0xff]   ;;  %v2675_v32 = vld [vmem:[#allocation7 + $0x98] sm:$0xff]   ;;  %v2679_v36 = vld [vmem:[#allocation7 + $0x90] sm:$0xff]   ;;  %s2013_s19 = scalar_lea.hbm %s3449_s5, %s2278_s6  ;;  %s2898_s26 = sshll.u32 %s3010_s12, 4  ;;  %s2899_s26 = int_to_ptr.vmem [resolvable:$false] %s2898_s26 }
  0x7e   : > { %v2680_v37 = vld [vmem:[#allocation7 + $0x48] sm:$0xff]   ;;  %v2685_v42 = vld [vmem:[#allocation7 + $0x40] sm:$0xff]   ;;  %v2689_v46 = vld [vmem:[#allocation7 + $0x178] sm:$0xff]   ;;  %p2897_p8 = pneg %p2896_p4  ;;  %s2900_s28 = scalar_lea.vmem %s2899_s26, 128 }
  0x7f   : > { %v2681_v38 = vld [vmem:[%s3238_s9 + $0x10] ss:$0 sps:$4 sm:$0xff]   ;;  %v2687_v43 = vld [vmem:[#allocation7 + $0xc0] sm:$0xff]   ;;  %vm603_vm5 = vmand %vm595_vm1, %vm599_vm2  ;;  %p2901_p0 = scmp.lt.s32.totalorder %s2016_s22, %s2899_s26  ;;  %p2902_p3 = scmp.lt.s32.totalorder %s2900_s28, %s2894_s23 }
  0x80   : > { %2436 = vmatpush3.bf16.msra.mxu0 %v2649_v4  ;;  %2297 = vmatpush3.bf16.msra.mxu1 %v2665_v22  ;;  %v2682_v39 = vld [vmem:[#allocation7 + $0x8] sm:$0xff]   ;;  %v2686_v44 = vld [vmem:[#allocation7] sm:$0xff]   ;;  %v2691_v47 = vld [vmem:[#allocation7 + $0x1f8] sm:$0xff]  }
  0x81   : > { %2437 = vmatprep.subr.bf16.mxu0 %v3007_v0  ;;  %2298 = vmatprep.subr.bf16.mxu1 %v2668_v25  ;;  %v2683_v40 = vld [vmem:[#allocation7 + $0xc8] sm:$0xff]   ;;  %v2688_v45 = vld [vmem:[#allocation7 + $0x80] sm:$0xff]   ;;  %vm604_vm6 = vmand %vm596_vm3, %vm600_vm4  ;;  %vm633_vm4 = vsmask.f32 7424  ;;  %p2903_p2 = por %p2902_p3, %p2901_p0 }
  0x82   : > { %v2684_v41 = vld [vmem:[#allocation7 + $0x88] sm:$0xff]   ;;  %vm615_vm7 = vmpackc.low %vm603_vm5, %vm603_vm5  ;;  %v2154_v58 = vld [vmem:[%s3401_s2] ss:$0 sm:$0xff]  ;;  %vm651_vm5 = vcmask 1046528  }
  0x83   : > { %vm616_vm8 = vmpackc.low %vm604_vm6, %vm604_vm6  ;;  %v619_v61 = vsel %vm615_vm7, 65537, %v3009_v60  ;;  %vm655_vm6 = vsmask.f32 6400  ;;  %vm862_vm7 = vsmask.f32 2304  ;;  %p2904_p5 = pnand %p2903_p2, %p2897_p8 }
  0x84   : > { %2438 = vmatpush3.bf16.msra.mxu0 %v2650_v5  ;;  %2299 = vmatpush3.bf16.msra.mxu1 %v2669_v26  ;;  %v620_v62 = vsel %vm616_vm8, 65537, %v3009_v60  ;;  %vm605_vm13 = vmand %vm597_vm9, %vm601_vm10  ;;  %vm663_vm8 = vcmask 1045504  }
  0x85   : > { %2439 = vmatprep.subr.bf16.mxu0 %v3007_v0  ;;  %2300 = vmatprep.subr.bf16.mxu1 %v2672_v29  ;;  %vm606_vm14 = vmand %vm598_vm11, %vm602_vm12  ;;  %v2168_v3 = vcombine.low %v619_v61, %v620_v62 }
  0x86   : > { %vm617_vm15 = vmpackc.low %vm605_vm13, %vm605_vm13 }
  0x87   : > { %vm618_vm1 = vmpackc.low %vm606_vm14, %vm606_vm14  ;;  %vm629_vm2 = vcmp.ne.s16.totalorder %v2168_v3, 0  ;;  %v621_v10 = vsel %vm617_vm15, 65537, %v3009_v60 }
  0x88   : > { %2440 = vmatpush3.bf16.msra.mxu0 %v2651_v6  ;;  %2301 = vmatpush3.bf16.msra.mxu1 %v2673_v30  ;;  %v622_v11 = vsel %vm618_vm1, 65537, %v3009_v60 }
  0x89   : > { %2441 = vmatprep.subr.bf16.mxu0 %v3007_v0  ;;  %2302 = vmatprep.subr.bf16.mxu1 %v2676_v33 }
  0x8c   : > { %2442 = vmatpush3.bf16.msra.mxu0 %v2652_v7  ;;  %2303 = vmatpush3.bf16.msra.mxu1 %v2677_v34 }
  0x8d   : > { %2443 = vmatprep.subr.bf16.mxu0 %v3007_v0  ;;  %2304 = vmatprep.subr.bf16.mxu1 %v2680_v37 }
  0x90   : > { %2444 = vmatpush3.bf16.msra.mxu0 %v2653_v8  ;;  %2305 = vmatpush3.bf16.msra.mxu1 %v2682_v39 }
  0x91   : > { %2314 = vmatprep.subr.bf16.mxu0 %v2658_v15  ;;  %2306 = vmatprep.subr.bf16.mxu1 %v2685_v42 }
  0x93   : > { %2446 = vmatmul.mubr.bf16.vlgmr.msra.gmra.mxu0 %v2654_v9 }
  0x94   : > { %2449 = vmatprep.mubr.msk.bf16.mxu0 %vm3008_vm0, %v3007_v0  ;;  %2315 = vmatpush3.bf16.msra.mxu0 %v2659_v16  ;;  %v2169_v16 = vcombine.low %v621_v10, %v622_v11  ;;  %v2690_v10 = vld [vmem:[#allocation7 + $0x138] sm:$0xff]  }
  0x95   : > { %2316 = vmatprep.subr.bf16.mxu0 %v2662_v19  ;;  %2307 = vmatpush3.bf16.msra.mxu1 %v2686_v44 }
  0x96   : > { %2336 = vmatprep.subr.bf16.mxu1 %v2689_v46  ;;  %vm630_vm3 = vcmp.ne.s16.totalorder %v2169_v16, 0 }
  0x98   : > { %2317 = vmatpush3.bf16.msra.mxu0 %v2663_v20 }
  0x99   : > { %2318 = vmatprep.subr.bf16.mxu0 %v2666_v23 }
  0x9b   : > { %2450 = vmatmul.mubr.bf16.gmra.mxu0 %v2156_v12 }
  0x9c   : > { %2453 = vmatprep.mubr.msk.bf16.mxu0 %vm3008_vm0, %v3007_v0  ;;  %2319 = vmatpush3.bf16.msra.mxu0 %v2667_v24 }
  0x9d   : > { %2320 = vmatprep.subr.bf16.mxu0 %v2670_v27 }
  0xa0   : > { %2321 = vmatpush3.bf16.msra.mxu0 %v2671_v28 }
  0xa1   : > { %2322 = vmatprep.subr.bf16.mxu0 %v2674_v31 }
  0xa3   : > { %2454 = vmatmul.mubr.bf16.gmra.mxu0 %v2681_v38 }
  0xa4   : > { %2323 = vmatpush3.bf16.msra.mxu0 %v2675_v32 }
  0xa5   : > { %2324 = vmatprep.subr.bf16.mxu0 %v2678_v35 }
  0xa8   : > { %2325 = vmatpush3.bf16.msra.mxu0 %v2679_v36 }
  0xa9   : > { %2326 = vmatprep.subr.bf16.mxu0 %v2683_v40 }
  0xac   : > { %2327 = vmatpush3.bf16.msra.mxu0 %v2684_v41 }
  0xad   : > { %2328 = vmatprep.subr.bf16.mxu0 %v2687_v43 }
  0xb0   : > { %2329 = vmatpush3.bf16.msra.mxu0 %v2688_v45 }
  0xb1   : > { %2358 = vmatprep.subr.bf16.mxu0 %v2691_v47 }
 0x153   : > { %v556_v59 = vpop.f32.mrf.mxu0 }
 0x154   : > { %v557_v1 = vadd.f32 %v2154_v58, %v556_v59 }
 0x155   : > { %v2447_v63 = vpop.f32.mrf.mxu0 }
 0x156   : > { %v577_v6 = vmax.f32 %v557_v1, 0.0 }
 0x157   : > { %v559_v2 = vpop.f32.mrf.mxu0 }
 0x158   : > { %v560_v4 = vadd.f32 %v2154_v58, %v559_v2 }
 0x159   : > { %v2448_v5 = vpop.f32.mrf.mxu0 }
 0x15a   : > { %v578_v7 = vmax.f32 %v560_v4, 0.0 }
 0x15b   : > { %v564_v8 = vpop.f32.mrf.mxu0 }
 0x15c   : > { %v581_v9 = vpack.c.bf16 %v578_v7, %v577_v6  ;;  %v565_v14 = vadd.f32 %v2154_v58, %v564_v8 }
 0x15d   : > { %v2451_v12 = vpop.f32.mrf.mxu0 }
 0x15e   : > { %v3274_v13 = vsel %vm629_vm2, %v581_v9, 0  ;;  %v579_v21 = vmax.f32 %v565_v14, 0.0 }
 0x15f   : > { %v567_v15 = vpop.f32.mrf.mxu0  ;;  %v635_v17 = vshrl.u32 %v3274_v13, 16  ;;  %v637_v18 = vshll.u32 %v3274_v13, 16  ;;  %v652_v33 = vrot.slane %v3274_v13, 1 }
 0x160   : > { %v568_v19 = vadd.f32 %v2154_v58, %v567_v15 }
 0x161   : > { %v2452_v20 = vpop.f32.mrf.mxu0  ;;  %v639_v23 = vrot.slane %v637_v18, 1  ;;  %v656_v24 = vrot.slane %v635_v17, 1  ;;  %v657_v25 = vrot.slane %v637_v18, 2  ;;  %v863_v28 = vrot.slane %v635_v17, 5 }
 0x162   : > { %v580_v22 = vmax.f32 %v568_v19, 0.0  ;;  %v864_v29 = vrot.slane %v637_v18, 6  ;;  %v2693_v19 = vld [vmem:[#allocation7 + $0x170] sm:$0xff]  }
 0x163   : > { %v640_v34 = vor.u32 %v639_v23, %v635_v17  ;;  %v658_v35 = vor.u32 %v657_v25, %v656_v24  ;;  %v2692_v25 = vld [vmem:[#allocation7 + $0x1b8] sm:$0xff]  }
 0x164   : > { %v582_v26 = vpack.c.bf16 %v580_v22, %v579_v21  ;;  %v865_v40 = vor.u32 %v864_v29, %v863_v28  ;;  %v2694_v29 = vld [vmem:[#allocation7 + $0x130] sm:$0xff]  }
 0x166   : > { %v3278_v27 = vsel %vm630_vm3, %v582_v26, 0 }
 0x167   : > { %v3281_v30 = vshll.u32 %v3278_v27, 16  ;;  %v3284_v31 = vshrl.u32 %v3278_v27, 16  ;;  %v653_v32 = vrot.slane %v3278_v27, 1 }
 0x169   : > { %v644_v36 = vrot.slane %v3281_v30, 1  ;;  %v866_v37 = vrot.slane %v3284_v31, 5  ;;  %v867_v38 = vrot.slane %v3281_v30, 6  ;;  %v659_v39 = vrot.slane %v3284_v31, 1 }
 0x16a   : > { %v660_v41 = vrot.slane %v3281_v30, 2  ;;  %v654_v42 = vsel %vm651_vm5, %v652_v33, %v653_v32  ;;  %v896_v43 = vshrl.u32 %v653_v32, 16  ;;  %v899_v47 = vshll.u32 %v653_v32, 16  ;;  %v2695_v32 = vld [vmem:[#allocation7 + $0x1f0] sm:$0xff]  }
 0x16b   : > { %v645_v44 = vsel %vm633_vm4, %v640_v34, %v644_v36  ;;  %v648_v45 = vor.u32 %v3284_v31, %v644_v36  ;;  %v888_v46 = vshrl.u32 %v654_v42, 16  ;;  %v891_v51 = vshll.u32 %v654_v42, 16  ;;  %v2697_v36 = vld [vmem:[#allocation7 + $0x168] sm:$0xff]  }
 0x16c   : > { %v871_v48 = vshrl.u32 %v645_v44, 16  ;;  %v874_v49 = vshll.u32 %v645_v44, 16  ;;  %v661_v50 = vor.u32 %v660_v41, %v659_v39  ;;  %v868_v54 = vor.u32 %v867_v38, %v866_v37  ;;  %v2696_v41 = vld [vmem:[#allocation7 + $0x1b0] sm:$0xff]   ;;  %v2698_v44 = vld [vmem:[#allocation7 + $0x128] sm:$0xff]  }
 0x16d   : > { %v879_v52 = vshrl.u32 %v648_v45, 16  ;;  %v882_v53 = vshll.u32 %v648_v45, 16  ;;  %v890_v55 = vrot.slane %v888_v46, 5  ;;  %v893_v4 = vrot.slane %v891_v51, 6  ;;  %v2699_v46 = vld [vmem:[#allocation7 + $0x1e8] sm:$0xff]   ;;  %v2703_v51 = vld [vmem:[#allocation7 + $0x1e0] sm:$0xff]  }
 0x16e   : > { %v873_v56 = vrot.slane %v871_v48, 5  ;;  %v876_v57 = vrot.slane %v874_v49, 6  ;;  %v662_v58 = vsel %vm655_vm6, %v658_v35, %v661_v50  ;;  %v913_v59 = vshrl.u32 %v661_v50, 16  ;;  %v2700_v49 = vld [vmem:[#allocation7 + $0x1a8] sm:$0xff]  }
 0x16f   : > { %v881_v60 = vrot.slane %v879_v52, 5  ;;  %v884_v61 = vrot.slane %v882_v53, 6  ;;  %v905_v62 = vshrl.u32 %v662_v58, 16  ;;  %v908_v63 = vshll.u32 %v662_v58, 16  ;;  %v2705_v52 = vld [vmem:[#allocation7 + $0x158] sm:$0xff]   ;;  %v2709_v58 = vld [vmem:[#allocation7 + $0x150] sm:$0xff]  }
 0x170   : > { %v877_v1 = vor.u32 %v876_v57, %v873_v56  ;;  %v915_v2 = vrot.slane %v913_v59, 5  ;;  %v916_v3 = vshll.u32 %v661_v50, 16  ;;  %v898_v8 = vrot.slane %v896_v43, 5  ;;  %v2702_v50 = vld [vmem:[#allocation7 + $0x120] sm:$0xff]   ;;  %v2706_v56 = vld [vmem:[#allocation7 + $0x118] sm:$0xff]  }
 0x171   : > { %v885_v5 = vor.u32 %v884_v61, %v881_v60  ;;  %v907_v6 = vrot.slane %v905_v62, 5  ;;  %v910_v7 = vrot.slane %v908_v63, 6  ;;  %v894_v11 = vor.u32 %v893_v4, %v890_v55  ;;  %v2707_v57 = vld [vmem:[#allocation7 + $0x1d8] sm:$0xff]   ;;  %v2710_v63 = vld [vmem:[#allocation7 + $0x110] sm:$0xff]  }
 0x172   : > { %v918_v9 = vrot.slane %v916_v3, 6  ;;  %v901_v12 = vrot.slane %v899_v47, 6  ;;  %v667_v14 = vrot.slane %v3284_v31, 2  ;;  %v668_v17 = vrot.slane %v3281_v30, 3  ;;  %v2701_v47 = vld [vmem:[#allocation7 + $0x160] sm:$0xff]   ;;  %v2708_v62 = vld [vmem:[#allocation7 + $0x198] sm:$0xff]  }
 0x173   : > { %v886_v15 = vsel %vm862_vm7, %v877_v1, %v885_v5  ;;  %v911_v16 = vor.u32 %v910_v7, %v907_v6  ;;  %v671_v18 = vrot.slane %v3284_v31, 3  ;;  %v869_v20 = vsel %vm862_vm7, %v865_v40, %v868_v54  ;;  %v2704_v54 = vld [vmem:[#allocation7 + $0x1a0] sm:$0xff]   ;;  %v2711_v1 = vld [vmem:[#allocation7 + $0x1d0] sm:$0xff]  }
 0x174   : > { %1563 = vmatprep.mubr.bf16.mxu1 %v886_v15  ;;  %v919_v21 = vor.u32 %v918_v9, %v915_v2  ;;  %v902_v22 = vor.u32 %v901_v12, %v898_v8  ;;  %v672_v23 = vrot.slane %v3281_v30, 4  ;;  %v669_v24 = vor.u32 %v668_v17, %v667_v14  ;;  %v2713_v2 = vld [vmem:[#allocation7 + $0x148] sm:$0xff]   ;;  %v2712_v7 = vld [vmem:[#allocation7 + $0x190] sm:$0xff]   ;;  %v2717_v9 = vld [vmem:[#allocation7 + $0x140] sm:$0xff]  }
 0x175   : > { %1564 = vmatmul.mubr.bf16.vlgmr.msra.gmra.mxu1 %v869_v20  ;;  %v665_v53 = vrot.slane %v3278_v27, 2  ;;  %v664_v55 = vrot.slane %v3274_v13, 2  ;;  %v675_v60 = vrot.slane %v3284_v31, 4  ;;  %v676_v61 = vrot.slane %v3281_v30, 5  ;;  %v2714_v31 = vld [vmem:[#allocation7 + $0x108] sm:$0xff]  }
 0x176   : > { %v920_v26 = vsel %vm862_vm7, %v911_v16, %v919_v21  ;;  %2337 = vmatpush3.bf16.msra.mxu1 %v2690_v10  ;;  %v673_v28 = vor.u32 %v672_v23, %v671_v18  ;;  %v903_v33 = vsel %vm862_vm7, %v894_v11, %v902_v22  ;;  %v939_v34 = vshrl.u32 %v669_v24, 16  ;;  %v2715_v8 = vld [vmem:[#allocation7 + $0x1c8] sm:$0xff]   ;;  %v2718_v18 = vld [vmem:[#allocation7 + $0x100] sm:$0xff]   ;;  %v2721_v22 = vld [vmem:[#allocation7 + $0x278] sm:$0xff]  }
 0x177   : > { %1603 = vmatprep.mubr.bf16.mxu0 %v920_v26  ;;  %v942_v35 = vshll.u32 %v669_v24, 16  ;;  %2338 = vmatprep.subr.bf16.mxu1 %v2693_v19  ;;  %v666_v59 = vsel %vm663_vm8, %v664_v55, %v665_v53  ;;  %v930_v4 = vshrl.u32 %v665_v53, 16  ;;  %v933_v5 = vshll.u32 %v665_v53, 16  ;;  %v2716_v17 = vld [vmem:[#allocation7 + $0x188] sm:$0xff]   ;;  %v2719_v19 = vld [vmem:[#allocation7 + $0x1c0] sm:$0xff]  }
 0x178   : > { %1604 = vmatmul.mubr.bf16.vlgmr.msra.gmra.mxu0 %v903_v33  ;;  %v957_v37 = vshrl.u32 %v673_v28, 16  ;;  %v960_v38 = vshll.u32 %v673_v28, 16  ;;  %v941_v39 = vrot.slane %v939_v34, 5  ;;  %v922_v13 = vshrl.u32 %v666_v59, 16  ;;  %v2720_v28 = vld [vmem:[#allocation7 + $0x180] sm:$0xff]   ;;  %v2722_v33 = vld [vmem:[#allocation7 + $0x238] sm:$0xff]  }
 0x179   : > { %v944_v40 = vrot.slane %v942_v35, 6  ;;  %2359 = vmatpush3.bf16.msra.mxu0 %v2692_v25  ;;  %v925_v3 = vshll.u32 %v666_v59, 16  ;;  %v677_v6 = vor.u32 %v676_v61, %v675_v60  ;;  %v670_v30 = vrot.slane %v3278_v27, 3  ;;  %v2724_v34 = vld [vmem:[#allocation7 + $0x270] sm:$0xff]   ;;  %v2740_v55 = vld [vmem:[#allocation7 + $0x208] sm:$0xff]   ;;  %v572_v60 = vpop.f32.mrf.mxu0 }
 0x17a   : > { %v959_v42 = vrot.slane %v957_v37, 5  ;;  %v962_v43 = vrot.slane %v960_v38, 6  ;;  %2339 = vmatpush3.bf16.msra.mxu1 %v2694_v29  ;;  %2360 = vmatprep.subr.bf16.mxu0 %v2695_v32  ;;  %v924_v10 = vrot.slane %v922_v13, 5  ;;  %v932_v12 = vrot.slane %v930_v4, 5  ;;  %v2723_v37 = vld [vmem:[#allocation7 + $0x2b8] sm:$0xff]   ;;  %v2741_v61 = vld [vmem:[#allocation7 + $0x288] sm:$0xff]  }
 0x17b   : > { %v945_v45 = vor.u32 %v944_v40, %v941_v39  ;;  %2340 = vmatprep.subr.bf16.mxu1 %v2697_v36  ;;  %v927_v11 = vrot.slane %v925_v3, 6  ;;  %v935_v14 = vrot.slane %v933_v5, 6  ;;  %v975_v15 = vshrl.u32 %v677_v6, 16  ;;  %v2725_v39 = vld [vmem:[#allocation7 + $0x230] sm:$0xff]   ;;  %v2727_v40 = vld [vmem:[#allocation7 + $0x268] sm:$0xff]  }
 0x17c   : > { %v963_v48 = vor.u32 %v962_v43, %v959_v42  ;;  %v978_v16 = vshll.u32 %v677_v6, 16  ;;  %v948_v20 = vshrl.u32 %v670_v30, 16  ;;  %v951_v21 = vshll.u32 %v670_v30, 16  ;;  %v2728_v42 = vld [vmem:[#allocation7 + $0x228] sm:$0xff]   ;;  %v2730_v43 = vld [vmem:[#allocation7 + $0x260] sm:$0xff]   ;;  %v2745_v30 = vld [vmem:[#allocation10 + $0x38] sm:$0xff]  }
 0x17d   : > { %1643 = vmatprep.mubr.bf16.mxu1 %v945_v45  ;;  %2361 = vmatpush3.bf16.msra.mxu0 %v2696_v41  ;;  %v928_v23 = vor.u32 %v927_v11, %v924_v10  ;;  %v936_v24 = vor.u32 %v935_v14, %v932_v12  ;;  %v977_v25 = vrot.slane %v975_v15, 5  ;;  %v2726_v41 = vld [vmem:[#allocation7 + $0x2b0] sm:$0xff]   ;;  %v2731_v45 = vld [vmem:[#allocation7 + $0x220] sm:$0xff]   ;;  %v674_v53 = vrot.slane %v3278_v27, 4  ;;  %v2748_v12 = vld [vmem:[#allocation10 + $0x28] sm:$0xff]  }
 0x17e   : > { %1683 = vmatprep.mubr.bf16.mxu0 %v963_v48  ;;  %2341 = vmatpush3.bf16.msra.mxu1 %v2698_v44  ;;  %v980_v26 = vrot.slane %v978_v16, 6  ;;  %v950_v29 = vrot.slane %v948_v20, 5  ;;  %v953_v32 = vrot.slane %v951_v21, 6  ;;  %v2729_v44 = vld [vmem:[#allocation7 + $0x2a8] sm:$0xff]   ;;  %v2734_v48 = vld [vmem:[#allocation7 + $0x218] sm:$0xff]   ;;  %v2746_v10 = vld [vmem:[#allocation10 + $0x30] sm:$0xff]  }
 0x17f   : > { %2362 = vmatprep.subr.bf16.mxu0 %v2699_v46  ;;  %2342 = vmatprep.subr.bf16.mxu1 %v2701_v47  ;;  %v937_v35 = vsel %vm862_vm7, %v928_v23, %v936_v24  ;;  %v2733_v46 = vld [vmem:[#allocation7 + $0x258] sm:$0xff]   ;;  %v2732_v47 = vld [vmem:[#allocation7 + $0x2a0] sm:$0xff]   ;;  %v969_v59 = vshll.u32 %v674_v53, 16  ;;  %v2749_v11 = vld [vmem:[#allocation8 + $0x30] sm:$0xff]  }
 0x180   : > { %v981_v36 = vor.u32 %v980_v26, %v977_v25  ;;  %v954_v38 = vor.u32 %v953_v32, %v950_v29  ;;  %v2751_v14 = vld [vmem:[#allocation8 + $0x28] sm:$0xff]   ;;  %v2750_v15 = vld [vmem:[#allocation10 + $0x20] sm:$0xff]   ;;  %v2757_v21 = vld [vmem:[#allocation8 + $0x10] sm:$0xff]  }
 0x181   : > { %2363 = vmatpush3.bf16.msra.mxu0 %v2700_v49  ;;  %v2736_v49 = vld [vmem:[#allocation7 + $0x250] sm:$0xff]   ;;  %v971_v3 = vrot.slane %v969_v59, 6  ;;  %v2753_v16 = vld [vmem:[#allocation8 + $0x20] sm:$0xff]   ;;  %v2756_v20 = vld [vmem:[#allocation10 + $0x8] sm:$0xff]  }
 0x182   : > { %2343 = vmatpush3.bf16.msra.mxu1 %v2702_v50  ;;  %2364 = vmatprep.subr.bf16.mxu0 %v2703_v51  ;;  %v2735_v50 = vld [vmem:[#allocation7 + $0x298] sm:$0xff]   ;;  %v2737_v51 = vld [vmem:[#allocation7 + $0x210] sm:$0xff]   ;;  %v2759_v23 = vld [vmem:[#allocation8 + $0x8] sm:$0xff]  }
 0x183   : > { %2344 = vmatprep.subr.bf16.mxu1 %v2705_v52  ;;  %v2739_v52 = vld [vmem:[#allocation7 + $0x248] sm:$0xff]   ;;  %v2761_v24 = vld [vmem:[%s3238_s9 + $0x8] sm:$0xf] }
 0x184   : > { %v2760_v25 = vld [vmem:[#allocation8] sm:$0xff]  }
 0x185   : > { %2365 = vmatpush3.bf16.msra.mxu0 %v2704_v54  ;;  %v2738_v54 = vld [vmem:[#allocation7 + $0x290] sm:$0xff]  }
 0x186   : > { %2345 = vmatpush3.bf16.msra.mxu1 %v2706_v56  ;;  %2366 = vmatprep.subr.bf16.mxu0 %v2707_v57  ;;  %v678_v56 = vrot.slane %v3278_v27, 5  ;;  %v2742_v57 = vld [vmem:[#allocation7 + $0x240] sm:$0xff]  }
 0x187   : > { %2346 = vmatprep.subr.bf16.mxu1 %v2709_v58  ;;  %v966_v58 = vshrl.u32 %v674_v53, 16  ;;  %v2744_v27 = vld [vmem:[#allocation7 + $0x280] sm:$0xff]  }
 0x189   : > { %2367 = vmatpush3.bf16.msra.mxu0 %v2708_v62  ;;  %v2455_v62 = vpop.f32.mrf.mxu0  ;;  %v968_v13 = vrot.slane %v966_v58, 5 }
 0x18a   : > { %2347 = vmatpush3.bf16.msra.mxu1 %v2710_v63  ;;  %2368 = vmatprep.subr.bf16.mxu0 %v2711_v1  ;;  %v2743_v63 = vld [vmem:[#allocation7 + $0x200] sm:$0xff]   ;;  %v984_v1 = vshrl.u32 %v678_v56, 16 }
 0x18b   : > { %2348 = vmatprep.subr.bf16.mxu1 %v2713_v2  ;;  %v987_v2 = vshll.u32 %v678_v56, 16  ;;  %v574_v4 = vpop.f32.mrf.mxu0 }
 0x18c   : > { %v986_v6 = vrot.slane %v984_v1, 5 }
 0x18d   : > { %2369 = vmatpush3.bf16.msra.mxu0 %v2712_v7  ;;  %v2456_v5 = vpop.f32.mrf.mxu0  ;;  %v989_v7 = vrot.slane %v987_v2, 6 }
 0x18e   : > { %2349 = vmatpush3.bf16.msra.mxu1 %v2714_v31  ;;  %2370 = vmatprep.subr.bf16.mxu0 %v2715_v8  ;;  %v972_v31 = vor.u32 %v971_v3, %v968_v13  ;;  %v2268_v5 = vld [vmem:[%s3407_s8] ss:$0 sm:$0xff] }
 0x18f   : > { %2350 = vmatprep.subr.bf16.mxu1 %v2717_v9  ;;  %v990_v8 = vor.u32 %v989_v7, %v986_v6  ;;  %v2747_v9 = vld [vmem:[#allocation8 + $0x38] sm:$0xff]  }
 0x190   : > { %v2259_v6 = vld [vmem:[%s3447_s3] ss:$0 sm:$0xff] }
 0x191   : > { %2371 = vmatpush3.bf16.msra.mxu0 %v2716_v17  ;;  %v2752_v17 = vld [vmem:[#allocation10 + $0x18] sm:$0xff]  }
 0x192   : > { %2351 = vmatpush3.bf16.msra.mxu1 %v2718_v18  ;;  %2372 = vmatprep.subr.bf16.mxu0 %v2719_v19  ;;  %v2755_v18 = vld [vmem:[#allocation8 + $0x18] sm:$0xff]   ;;  %v2754_v19 = vld [vmem:[#allocation10 + $0x10] sm:$0xff]  }
 0x193   : > { %2380 = vmatprep.subr.bf16.mxu1 %v2721_v22  ;;  %v2758_v22 = vld [vmem:[#allocation10] sm:$0xff]  }
 0x195   : > { %2373 = vmatpush3.bf16.msra.mxu0 %v2720_v28  ;;  %1644 = vmatmul.mubr.bf16.vlgmr.msra.gmra.mxu1 %v937_v35 }
 0x196   : > { %2381 = vmatpush3.bf16.msra.mxu1 %v2722_v33  ;;  %1723 = vmatprep.mubr.bf16.mxu1 %v981_v36 }
 0x197   : > { %2457 = vmatprep.subr.bf16.mxu0 %v3007_v0  ;;  %2382 = vmatprep.subr.bf16.mxu1 %v2724_v34 }
 0x198   : > { %1684 = vmatmul.mubr.bf16.vlgmr.msra.gmra.mxu0 %v954_v38 }
 0x199   : > { %2458 = vmatpush3.bf16.msra.mxu0 %v2723_v37  ;;  %2473 = vmatprep.mubr.msk.bf16.mxu0 %vm3008_vm0, %v3007_v0 }
 0x19a   : > { %2383 = vmatpush3.bf16.msra.mxu1 %v2725_v39  ;;  %2459 = vmatprep.subr.bf16.mxu0 %v3007_v0 }
 0x19b   : > { %2384 = vmatprep.subr.bf16.mxu1 %v2727_v40 }
 0x19d   : > { %2460 = vmatpush3.bf16.msra.mxu0 %v2726_v41 }
 0x19e   : > { %2385 = vmatpush3.bf16.msra.mxu1 %v2728_v42  ;;  %2461 = vmatprep.subr.bf16.mxu0 %v3007_v0 }
 0x19f   : > { %2386 = vmatprep.subr.bf16.mxu1 %v2730_v43 }
 0x1a1   : > { %2462 = vmatpush3.bf16.msra.mxu0 %v2729_v44 }
 0x1a2   : > { %2387 = vmatpush3.bf16.msra.mxu1 %v2731_v45  ;;  %2463 = vmatprep.subr.bf16.mxu0 %v3007_v0 }
 0x1a3   : > { %2388 = vmatprep.subr.bf16.mxu1 %v2733_v46 }
 0x1a5   : > { %2464 = vmatpush3.bf16.msra.mxu0 %v2732_v47 }
 0x1a6   : > { %2389 = vmatpush3.bf16.msra.mxu1 %v2734_v48  ;;  %2465 = vmatprep.subr.bf16.mxu0 %v3007_v0 }
 0x1a7   : > { %2390 = vmatprep.subr.bf16.mxu1 %v2736_v49 }
 0x1a9   : > { %2466 = vmatpush3.bf16.msra.mxu0 %v2735_v50 }
 0x1aa   : > { %2391 = vmatpush3.bf16.msra.mxu1 %v2737_v51  ;;  %2467 = vmatprep.subr.bf16.mxu0 %v3007_v0 }
 0x1ab   : > { %2392 = vmatprep.subr.bf16.mxu1 %v2739_v52 }
 0x1ad   : > { %2468 = vmatpush3.bf16.msra.mxu0 %v2738_v54 }
 0x1ae   : > { %2393 = vmatpush3.bf16.msra.mxu1 %v2740_v55  ;;  %2469 = vmatprep.subr.bf16.mxu0 %v3007_v0 }
 0x1af   : > { %2394 = vmatprep.subr.bf16.mxu1 %v2742_v57 }
 0x1b1   : > { %2470 = vmatpush3.bf16.msra.mxu0 %v2741_v61 }
 0x1b2   : > { %2395 = vmatpush3.bf16.msra.mxu1 %v2743_v63  ;;  %2471 = vmatprep.subr.bf16.mxu0 %v3007_v0 }
 0x1b3   : > { %2477 = vmatprep.subr.bf16.mxu1 %v3007_v0 }
 0x1b5   : > { %2472 = vmatpush3.bf16.msra.mxu0 %v2744_v27  ;;  %1724 = vmatmul.mubr.bf16.vlgmr.msra.gmra.mxu1 %v972_v31 }
 0x1b6   : > { %2497 = vmatprep.subr.bf16.mxu0 %v3007_v0  ;;  %2493 = vmatprep.mubr.msk.bf16.mxu1 %vm3008_vm0, %v3007_v0 }
 0x1b7   : > { %2478 = vmatpush3.bf16.msra.mxu1 %v2747_v9 }
 0x1b8   : > { %2474 = vmatmul.mubr.bf16.vlgmr.msra.gmra.mxu0 %v990_v8  ;;  %2479 = vmatprep.subr.bf16.mxu1 %v3007_v0 }
 0x1b9   : > { %2513 = vmatprep.mubr.msk.bf16.mxu0 %vm3008_vm0, %v3007_v0  ;;  %2498 = vmatpush3.bf16.msra.mxu0 %v2745_v30 }
 0x1ba   : > { %2499 = vmatprep.subr.bf16.mxu0 %v3007_v0 }
 0x1bb   : > { %2480 = vmatpush3.bf16.msra.mxu1 %v2749_v11 }
 0x1bc   : > { %2481 = vmatprep.subr.bf16.mxu1 %v3007_v0 }
 0x1bd   : > { %2500 = vmatpush3.bf16.msra.mxu0 %v2746_v10 }
 0x1be   : > { %2501 = vmatprep.subr.bf16.mxu0 %v3007_v0 }
 0x1bf   : > { %2482 = vmatpush3.bf16.msra.mxu1 %v2751_v14 }
 0x1c0   : > { %2483 = vmatprep.subr.bf16.mxu1 %v3007_v0 }
 0x1c1   : > { %2502 = vmatpush3.bf16.msra.mxu0 %v2748_v12 }
 0x1c2   : > { %2503 = vmatprep.subr.bf16.mxu0 %v3007_v0 }
 0x1c3   : > { %2484 = vmatpush3.bf16.msra.mxu1 %v2753_v16 }
 0x1c4   : > { %2485 = vmatprep.subr.bf16.mxu1 %v3007_v0 }
 0x1c5   : > { %2504 = vmatpush3.bf16.msra.mxu0 %v2750_v15 }
 0x1c6   : > { %2505 = vmatprep.subr.bf16.mxu0 %v3007_v0 }
 0x1c7   : > { %2486 = vmatpush3.bf16.msra.mxu1 %v2755_v18 }
 0x1c8   : > { %2487 = vmatprep.subr.bf16.mxu1 %v3007_v0 }
 0x1c9   : > { %2506 = vmatpush3.bf16.msra.mxu0 %v2752_v17 }
 0x1ca   : > { %2507 = vmatprep.subr.bf16.mxu0 %v3007_v0 }
 0x1cb   : > { %2488 = vmatpush3.bf16.msra.mxu1 %v2757_v21 }
 0x1cc   : > { %2489 = vmatprep.subr.bf16.mxu1 %v3007_v0 }
 0x1cd   : > { %2508 = vmatpush3.bf16.msra.mxu0 %v2754_v19 }
 0x1ce   : > { %2509 = vmatprep.subr.bf16.mxu0 %v3007_v0 }
 0x1cf   : > { %2490 = vmatpush3.bf16.msra.mxu1 %v2759_v23 }
 0x1d0   : > { %2491 = vmatprep.subr.bf16.mxu1 %v3007_v0 }
 0x1d1   : > { %2510 = vmatpush3.bf16.msra.mxu0 %v2756_v20 }
 0x1d2   : > { %2511 = vmatprep.subr.bf16.mxu0 %v3007_v0  ;;  %v2170_v0 = vld [vmem:[%s3403_s4] ss:$0 sm:$0xff] }
 0x1d3   : > { %2492 = vmatpush3.bf16.msra.mxu1 %v2760_v25 }
 0x1d5   : > { %2512 = vmatpush3.bf16.msra.mxu0 %v2758_v22 }
 0x1d8   : > { %2514 = vmatmul.mubr.bf16.vlgmr.msra.gmra.mxu0 %v2761_v24 }
 0x235   : > { %v2308_v26 = vpop.f32.mrf.mxu1 }
 0x237   : > { %v2309_v28 = vpop.f32.mrf.mxu1 }
 0x238   : > { %v2330_v29 = vpop.f32.mrf.mxu0  ;;  %v2310_v45 = vadd.f32 %v2309_v28, %v2308_v26 }
 0x239   : > { %v2311_v32 = vpop.f32.mrf.mxu1 }
 0x23a   : > { %v2331_v33 = vpop.f32.mrf.mxu0  ;;  %v1566_v46 = vadd.f32 %v2310_v45, %v2170_v0 }
 0x23b   : > { %v2312_v34 = vpop.f32.mrf.mxu1  ;;  %v2332_v47 = vadd.f32 %v2331_v33, %v2330_v29 }
 0x23c   : > { %v2333_v35 = vpop.f32.mrf.mxu0 }
 0x23d   : > { %v1606_v49 = vadd.f32 %v2332_v47, %v1566_v46 }
 0x23e   : > { %v2334_v36 = vpop.f32.mrf.mxu0 }
 0x255   : > { %v2352_v37 = vpop.f32.mrf.mxu1 }
 0x257   : > { %v2353_v38 = vpop.f32.mrf.mxu1 }
 0x258   : > { %v2374_v39 = vpop.f32.mrf.mxu0  ;;  %v2354_v48 = vadd.f32 %v2353_v38, %v2352_v37 }
 0x259   : > { %v2355_v40 = vpop.f32.mrf.mxu1 }
 0x25a   : > { %v2375_v41 = vpop.f32.mrf.mxu0  ;;  %v1646_v50 = vadd.f32 %v2354_v48, %v1606_v49 }
 0x25b   : > { %v2356_v42 = vpop.f32.mrf.mxu1  ;;  %v2376_v51 = vadd.f32 %v2375_v41, %v2374_v39 }
 0x25c   : > { %v2377_v43 = vpop.f32.mrf.mxu0 }
 0x25d   : > { %v1686_v54 = vadd.f32 %v2376_v51, %v1646_v50 }
 0x25e   : > { %v2378_v44 = vpop.f32.mrf.mxu0 }
 0x275   : > { %v2396_v52 = vpop.f32.mrf.mxu1 }
 0x277   : > { %v2397_v53 = vpop.f32.mrf.mxu1 }
 0x278   : > { %v1765_v55 = vpop.f32.mrf.mxu0  ;;  %v2398_v56 = vadd.f32 %v2397_v53, %v2396_v52 }
 0x279   : > { %v2399_v57 = vpop.f32.mrf.mxu1 }
 0x27a   : > { %v1726_v58 = vadd.f32 %v2398_v56, %v1686_v54  ;;  %v2475_v59 = vpop.f32.mrf.mxu0 }
 0x27b   : > { %v2400_v60 = vpop.f32.mrf.mxu1 }
 0x27c   : > { %v1766_v61 = vadd.f32 %v1765_v55, %v1726_v58  ;;  %v1768_v62 = vpop.f32.mrf.mxu0 }
 0x27e   : > { %v1771_v63 = vmax.f32 %v1766_v61, 0.0  ;;  %v2476_v1 = vpop.f32.mrf.mxu0 }
 0x280   : > { %v1772_v2 = vpack.c.bf16 %v1771_v63, %v1771_v63 }
 0x282   : > { %2494 = vmatmul.mubr.bf16.vlgmr.msra.gmra.mxu1 %v1772_v2 }
 0x298   : > { %v1989_v13 = vpop.f32.mrf.mxu0 }
 0x299   : > { %v1990_v7 = vadd.f32 %v2268_v5, %v1989_v13 }
 0x29a   : > { %v2515_v3 = vpop.f32.mrf.mxu0 }
 0x29c   : > { %v1992_v4 = vpop.f32.mrf.mxu0 }
 0x29e   : > { %v2516_v27 = vpop.f32.mrf.mxu0 }
 0x342   : > { %v1878_v31 = vpop.f32.mrf.mxu1 }
 0x343   : > { %v1879_v8 = vadd.f32 %v2259_v6, %v1878_v31 }
 0x344   : > { %v2495_v30 = vpop.f32.mrf.mxu1 }
 0x345   : > { %v1995_v9 = vadd.f32 %v1990_v7, %v1879_v8 }
 0x346   : > { %v1881_v10 = vpop.f32.mrf.mxu1 }
 0x347   : > { %v1996_v11 = vmax.f32 %v1995_v9, 0.0 }
 0x348   : > { %v2496_v12 = vpop.f32.mrf.mxu1 }
 0x349   : > { %v1997_v14 = vpack.c.bf16 %v1996_v11, %v1996_v11 }
 0x34b   : > { %1998 = vst [vmem:[%s426_s24] sm:$0xf] %v1997_v14 }
 0x34c   : > { %2907 = shalt.err (!%p2904_p5)
}
 0x34d   : > { %s2908_s29 = scalar_lea.hbm %s2013_s19, 64  ;;  %s2912_s20 = scalar_lea.hbm %s3449_s5, 384 }
 0x34e   : > { %p2909_p11 = scmp.ne.s32.totalorder %s2013_s19, %s2908_s29  ;;  %p2913_p9 = scmp.lt.s32.totalorder %s2013_s19, %s3449_s5 }
 0x34f   : > { %p2914_p10 = scmp.lt.s32.totalorder %s2912_s20, %s2908_s29 }
 0x350   : > { %p2910_p7 = pnand %p2909_p11, %p3200_p12 }
 0x351   : > { %p2915_p13 = por %p2914_p10, %p2913_p9 }
 0x352   : > { %p2911_p6 = pneg %p2910_p7 }
 0x354   : > { %p2916_p1 = pnand %p2915_p13, %p2911_p6 }
 0x356   : > { %2919 = shalt.err (!%p2916_p1)
}
 0x357   : > { %2540 = dma.vmem_to_hbm [thread:$0]  (%p3200_p12), %s2016_s22, 64, %s2013_s19, %s2000_s21  }
 0x358 PF: > { %s3450_s3 = sld [smem:[#allocation17_spill]] }
 0x359   : > { %s3451_s25 = sld [smem:[#allocation16_spill]] }
 0x35a   : > { %s3452_s17 = sld [smem:[#allocation18_spill]] }
 0x35e   : > { %p2572_p4 = scmp.ge.s32.totalorder %s3450_s3, 2 }
 0x35f   : > { %s2027_s6 = sand.u32 1, %s3451_s25  }
 0x360   : > { %p3453_p8 = scmp.ne.s32.totalorder %s3452_s17, 0  ;;  %s2028_s24 = scalar_lea.sflag [#allocation4], %s2027_s6 }
 0x362   : > { %p2560_p0 = pnand %p2572_p4, %p3453_p8 }
 0x364   : > { %p2561_p3 = pneg %p2560_p0 }
 0x366   : > { %2965 = dma.done.wait (%p2561_p3), %s2028_s24, 64  }
 0x367   : > { %2967 = vsyncadd (%p2561_p3), %s2028_s24, 4294967232  ;;  %s27_s16 = sadd.s32 1, %s3450_s3   ;;  %s3454_s1 = sld [smem:[#allocation19_spill]] }
 0x368   : > { %p24_p2 = scmp.ge.s32.totalorder %s27_s16, 8   ;;  %s3455_s22 = sld [smem:[#allocation21_spill]] }
 0x369   : > { %s3456_s30 = smov %s2974_s10  ;;  %s3457_s10 = smov %s2978_s11 }
 0x36a   : > { %s3458_s11 = smov %s3219_s7  ;;  %s3459_s12 = smov %s2990_s14 }
 0x36b   : > { %s3460_s13 = smov %s2994_s15  ;;  %26 = sbr.rel (!%p24_p2) target bundleno = 16 (0x10), region = 117 }
 0x36d   : > { %s3461_s14 = smov %s3454_s1 }
 0x36e   : > { %s3462_s15 = smov %s3455_s22 }
 0x370   :  { %2033 = vsyncpa [#allocation3], 1 }
 0x371   :  { %2035 = vsyncpa [#allocation3 + $0x1], 1 }
 0x372   :  { %2036 = vsyncpa [#allocation6], 1 }
 0x373   :  { %2037 = vsyncpa [#allocation9], 1 }
 0x374   :  { %2038 = vsyncpa [#allocation4], 1 }
 0x375   :  { %2040 = vsyncpa [#allocation4 + $0x1], 1 }

</bundles_post_ra>
